<compile_context>
chip_gen: v5e
topology: v5e:2x2
jax: 0.10.0
libtpu: 0.0.40
codegen_flags: <defaults>
</compile_context>

<pallas_src>
import math
import numpy as np
import jax
import jax.numpy as jnp
from jax import lax
from jax.experimental import pallas as pl
from jax.experimental.pallas import tpu as pltpu

INPUT_SIZE = 4
HIDDEN_SIZE = 32
NUM_LAYERS = 2
SEQ_LEN = 8
BATCH = 1  # forced to 1 by the registered h/c buffers (num_layers, 1, hidden)


def _lstm_kernel(x_ref, wih0_ref, whh0_ref, b0_ref, wih1_ref, whh1_ref, b1_ref,
                 state_ref, out_state_ref):
    H = HIDDEN_SIZE
    T = SEQ_LEN

    # ---- Hoisted layer-0 input projection: (T, I) @ (I, 4H) + b0 -> (T, 4H) ----
    # Kept as a VALUE: (8, 128) is exactly one f32 vreg, no scratch round trip.
    xproj = (jnp.dot(x_ref[...], wih0_ref[...], preferred_element_type=jnp.float32)
             + b0_ref[...])

    # Weights loaded once, reused across all unrolled steps (12 vregs total).
    whh0 = whh0_ref[...]   # (H, 4H)
    wih1 = wih1_ref[...]   # (H, 4H)
    whh1 = whh1_ref[...]   # (H, 4H)
    b1 = b1_ref[...]       # (1, 4H)

    def gates_to_hc(gates, c_prev):
        # Gate order (i, f, o, g): one contiguous sigmoid pass + one tanh pass.
        sig = jax.nn.sigmoid(gates[:, 0:3 * H])     # (1, 3H)
        i = sig[:, 0:H]
        f = sig[:, H:2 * H]
        o = sig[:, 2 * H:3 * H]
        g = jnp.tanh(gates[:, 3 * H:4 * H])         # (1, H)
        c_new = f * c_prev + i * g
        h_new = o * jnp.tanh(c_new)
        return h_new, c_new

    # Packed initial state (4, H): [h_l0; h_l1; c_l0; c_l1].  Cheap sublane slices.
    h0 = state_ref[0:1, :]
    h1 = state_ref[1:2, :]
    c0 = state_ref[2:3, :]
    c1 = state_ref[3:4, :]

    # Fully unrolled static time loop (T = 8); t is a Python int -> static slices.
    for t in range(T):
        # Layer-1 recurrent term depends only on the PREVIOUS step's h1, so it is
        # issued first and can overlap with all of layer 0 below (no concat needed).
        g1_rec = jnp.dot(h1, whh1, preferred_element_type=jnp.float32) + b1
        # Layer 0: single recurrent matmul; input projection was precomputed.
        g0 = xproj[t:t + 1, :] + jnp.dot(h0, whh0,
                                         preferred_element_type=jnp.float32)
        h0, c0 = gates_to_hc(g0, c0)
        # Layer 1: add the input-projection of the freshly computed h0.
        g1 = g1_rec + jnp.dot(h0, wih1, preferred_element_type=jnp.float32)
        h1, c1 = gates_to_hc(g1, c1)

    # Single packed (4, H) store: [h_l0; h_l1; c_l0; c_l1].
    out_state_ref[...] = jnp.concatenate([h0, h1, c0, c1], axis=0)


def lstm_forward(x, params, h0, c0):
    """x: (B=1, T, I) batch_first. Returns (out[:, -1, :].flatten(), h_end, c_end)."""
    xs = x[0]  # (T, I) — batch is 1 by construction of the module's buffers
    state0 = jnp.concatenate([h0, c0], axis=0)  # (4, H): [h_l0; h_l1; c_l0; c_l1]
    vmem = pl.BlockSpec(memory_space=pltpu.MemorySpace.VMEM)
    state_end = pl.pallas_call(
        _lstm_kernel,
        out_shape=jax.ShapeDtypeStruct((2 * NUM_LAYERS, HIDDEN_SIZE), jnp.float32),
        in_specs=[vmem] * 8,
        out_specs=vmem,
    )(xs, params["wih0"], params["whh0"], params["b0"],
      params["wih1"], params["whh1"], params["b1"], state0)
    h_end = state_end[:NUM_LAYERS]
    c_end = state_end[NUM_LAYERS:]
    # PyTorch: out[:, -1, :].flatten() == final hidden of the top layer (batch=1).
    out = h_end[NUM_LAYERS - 1]
    return out.reshape(-1), h_end, c_end


def init_raw_lstm_weights(key, input_size, hidden_size):
    """Deterministic init mirroring nn.LSTM: U(-1/sqrt(H), 1/sqrt(H)), PyTorch layout."""
    k = 1.0 / math.sqrt(hidden_size)
    H4 = 4 * hidden_size
    keys = jax.random.split(key, 8)

    def u(kk, shape):
        return jax.random.uniform(kk, shape, jnp.float32, minval=-k, maxval=k)

    return {
        "w_ih_l0": u(keys[0], (H4, input_size)),   # (4H, I)
        "w_hh_l0": u(keys[1], (H4, hidden_size)),  # (4H, H)
        "b_ih_l0": u(keys[2], (H4,)),
        "b_hh_l0": u(keys[3], (H4,)),
        "w_ih_l1": u(keys[4], (H4, hidden_size)),  # (4H, H)
        "w_hh_l1": u(keys[5], (H4, hidden_size)),  # (4H, H)
        "b_ih_l1": u(keys[6], (H4,)),
        "b_hh_l1": u(keys[7], (H4,)),
    }


def prepare_kernel_params(raw, hidden_size):
    """Transpose to (in, 4H), permute gate columns (i,f,g,o)->(i,f,o,g),
    pre-sum biases, and keep layer-1 input/hidden weights SEPARATE (no concat)."""
    H = hidden_size
    perm = np.concatenate([np.arange(0, 2 * H),          # i, f
                           np.arange(3 * H, 4 * H),       # o
                           np.arange(2 * H, 3 * H)])      # g

    def pc(w):  # permute columns of a (*, 4H) array
        return w[:, perm]

    wih0 = pc(raw["w_ih_l0"].T)                                   # (I, 4H)
    whh0 = pc(raw["w_hh_l0"].T)                                   # (H, 4H)
    b0 = pc((raw["b_ih_l0"] + raw["b_hh_l0"]).reshape(1, -1))     # (1, 4H)
    wih1 = pc(raw["w_ih_l1"].T)                                   # (H, 4H)
    whh1 = pc(raw["w_hh_l1"].T)                                   # (H, 4H)
    b1 = pc((raw["b_ih_l1"] + raw["b_hh_l1"]).reshape(1, -1))     # (1, 4H)
    return {"wih0": wih0, "whh0": whh0, "b0": b0,
            "wih1": wih1, "whh1": whh1, "b1": b1}


def _reference_forward(x, raw, h0, c0):
    """Pure-JAX reference of the same LSTM math using raw PyTorch-layout weights."""
    H = HIDDEN_SIZE
    xs = x[0]
    h = [h0[l:l + 1] for l in range(NUM_LAYERS)]
    c = [c0[l:l + 1] for l in range(NUM_LAYERS)]
    wih = [raw["w_ih_l0"].T, raw["w_ih_l1"].T]
    whh = [raw["w_hh_l0"].T, raw["w_hh_l1"].T]
    b = [(raw["b_ih_l0"] + raw["b_hh_l0"]).reshape(1, -1),
         (raw["b_ih_l1"] + raw["b_hh_l1"]).reshape(1, -1)]
    out = None
    for t in range(xs.shape[0]):
        inp = xs[t:t + 1]
        for l in range(NUM_LAYERS):
            g = inp @ wih[l] + h[l] @ whh[l] + b[l]
            i = jax.nn.sigmoid(g[:, 0:H]); f = jax.nn.sigmoid(g[:, H:2 * H])
            gg = jnp.tanh(g[:, 2 * H:3 * H]); o = jax.nn.sigmoid(g[:, 3 * H:4 * H])
            c[l] = f * c[l] + i * gg
            h[l] = o * jnp.tanh(c[l])
            inp = h[l]
        out = inp
    return out.reshape(-1), jnp.concatenate(h, 0), jnp.concatenate(c, 0)


if __name__ == "__main__":
    key = jax.random.PRNGKey(0)
    kx, kp = jax.random.split(key)

    # batch_first input: (B=1, T, I)
    x = jax.random.normal(kx, (BATCH, SEQ_LEN, INPUT_SIZE), dtype=jnp.float32)
    raw = init_raw_lstm_weights(kp, INPUT_SIZE, HIDDEN_SIZE)
    params = prepare_kernel_params(raw, HIDDEN_SIZE)

    # module buffers: zeros of (num_layers, 1, hidden) -> squeeze the batch dim
    h0 = jnp.zeros((NUM_LAYERS, HIDDEN_SIZE), jnp.float32)
    c0 = jnp.zeros((NUM_LAYERS, HIDDEN_SIZE), jnp.float32)

    out, h_end, c_end = jax.jit(lstm_forward)(x, params, h0, c0)
    jax.block_until_ready((out, h_end, c_end))

    # sanity-check against a pure-JAX reference of the same recurrence
    ref_out, ref_h, ref_c = _reference_forward(x, raw, h0, c0)
    assert np.allclose(np.asarray(out), np.asarray(ref_out), atol=1e-5, rtol=1e-5)
    assert np.allclose(np.asarray(h_end), np.asarray(ref_h), atol=1e-5, rtol=1e-5)
    assert np.allclose(np.asarray(c_end), np.asarray(ref_c), atol=1e-5, rtol=1e-5)

    print("KERNEL_OK")
</pallas_src>

<mosaic_0001>
module attributes {stable_mosaic.version = 11 : i64} {
  func.func @_lstm_kernel(%arg0: memref<8x4xf32, #tpu.memory_space<vmem>>, %arg1: memref<4x128xf32, #tpu.memory_space<vmem>>, %arg2: memref<32x128xf32, #tpu.memory_space<vmem>>, %arg3: memref<1x128xf32, #tpu.memory_space<vmem>>, %arg4: memref<32x128xf32, #tpu.memory_space<vmem>>, %arg5: memref<32x128xf32, #tpu.memory_space<vmem>>, %arg6: memref<1x128xf32, #tpu.memory_space<vmem>>, %arg7: memref<4x32xf32, #tpu.memory_space<vmem>>, %arg8: memref<4x32xf32, #tpu.memory_space<vmem>>) attributes {dimension_semantics = [], scalar_prefetch = 0 : i64, scratch_operands = 0 : i64, tpu.core_type = #tpu.core_type<tc>} {
    %c0 = arith.constant 0 : index
    %c0_0 = arith.constant 0 : index
    %0 = vector.load %arg0[%c0, %c0_0] : memref<8x4xf32, #tpu.memory_space<vmem>>, vector<8x4xf32>
    %c0_1 = arith.constant 0 : index
    %c0_2 = arith.constant 0 : index
    %1 = vector.load %arg1[%c0_1, %c0_2] : memref<4x128xf32, #tpu.memory_space<vmem>>, vector<4x128xf32>
    %cst = arith.constant dense<0.000000e+00> : vector<8x128xf32>
    %2 = tpu.matmul %0, %1, %cst {dimension_numbers = #tpu.dot_dimension_numbers<[1], [0], [0], [1], [0, 0, 1, 1], [], []>} : vector<8x4xf32>, vector<4x128xf32>, vector<8x128xf32> -> vector<8x128xf32>
    %c0_3 = arith.constant 0 : index
    %c0_4 = arith.constant 0 : index
    %3 = vector.load %arg3[%c0_3, %c0_4] : memref<1x128xf32, #tpu.memory_space<vmem>>, vector<1x128xf32>
    %4 = vector.broadcast %3 : vector<1x128xf32> to vector<8x128xf32>
    %5 = arith.addf %2, %4 : vector<8x128xf32>
    %c0_5 = arith.constant 0 : index
    %c0_6 = arith.constant 0 : index
    %6 = vector.load %arg2[%c0_5, %c0_6] : memref<32x128xf32, #tpu.memory_space<vmem>>, vector<32x128xf32>
    %c0_7 = arith.constant 0 : index
    %c0_8 = arith.constant 0 : index
    %7 = vector.load %arg4[%c0_7, %c0_8] : memref<32x128xf32, #tpu.memory_space<vmem>>, vector<32x128xf32>
    %c0_9 = arith.constant 0 : index
    %c0_10 = arith.constant 0 : index
    %8 = vector.load %arg5[%c0_9, %c0_10] : memref<32x128xf32, #tpu.memory_space<vmem>>, vector<32x128xf32>
    %c0_11 = arith.constant 0 : index
    %c0_12 = arith.constant 0 : index
    %9 = vector.load %arg6[%c0_11, %c0_12] : memref<1x128xf32, #tpu.memory_space<vmem>>, vector<1x128xf32>
    %c0_13 = arith.constant 0 : index
    %c0_14 = arith.constant 0 : index
    %10 = vector.load %arg7[%c0_13, %c0_14] : memref<4x32xf32, #tpu.memory_space<vmem>>, vector<1x32xf32>
    %c1 = arith.constant 1 : index
    %c0_15 = arith.constant 0 : index
    %11 = vector.load %arg7[%c1, %c0_15] : memref<4x32xf32, #tpu.memory_space<vmem>>, vector<1x32xf32>
    %c2 = arith.constant 2 : index
    %c0_16 = arith.constant 0 : index
    %12 = vector.load %arg7[%c2, %c0_16] : memref<4x32xf32, #tpu.memory_space<vmem>>, vector<1x32xf32>
    %c3 = arith.constant 3 : index
    %c0_17 = arith.constant 0 : index
    %13 = vector.load %arg7[%c3, %c0_17] : memref<4x32xf32, #tpu.memory_space<vmem>>, vector<1x32xf32>
    %cst_18 = arith.constant dense<0.000000e+00> : vector<1x128xf32>
    %14 = tpu.matmul %11, %8, %cst_18 {dimension_numbers = #tpu.dot_dimension_numbers<[1], [0], [0], [1], [0, 0, 1, 1], [], []>} : vector<1x32xf32>, vector<32x128xf32>, vector<1x128xf32> -> vector<1x128xf32>
    %15 = arith.addf %14, %9 : vector<1x128xf32>
    %16 = vector.extract_strided_slice %5 {offsets = [0, 0], sizes = [1, 128], strides = [1, 1]} : vector<8x128xf32> to vector<1x128xf32>
    %cst_19 = arith.constant dense<0.000000e+00> : vector<1x128xf32>
    %17 = tpu.matmul %10, %6, %cst_19 {dimension_numbers = #tpu.dot_dimension_numbers<[1], [0], [0], [1], [0, 0, 1, 1], [], []>} : vector<1x32xf32>, vector<32x128xf32>, vector<1x128xf32> -> vector<1x128xf32>
    %18 = arith.addf %16, %17 : vector<1x128xf32>
    %19 = vector.extract_strided_slice %18 {offsets = [0, 0], sizes = [1, 96], strides = [1, 1]} : vector<1x128xf32> to vector<1x96xf32>
    %20 = arith.negf %19 : vector<1x96xf32>
    %21 = math.exp %20 : vector<1x96xf32>
    %cst_20 = arith.constant 1.000000e+00 : f32
    %22 = vector.broadcast %cst_20 : f32 to vector<1x96xf32>
    %23 = arith.addf %22, %21 : vector<1x96xf32>
    %24 = arith.divf %22, %23 : vector<1x96xf32>
    %25 = vector.extract_strided_slice %24 {offsets = [0, 0], sizes = [1, 32], strides = [1, 1]} : vector<1x96xf32> to vector<1x32xf32>
    %26 = vector.extract_strided_slice %24 {offsets = [0, 32], sizes = [1, 32], strides = [1, 1]} : vector<1x96xf32> to vector<1x32xf32>
    %27 = vector.extract_strided_slice %24 {offsets = [0, 64], sizes = [1, 32], strides = [1, 1]} : vector<1x96xf32> to vector<1x32xf32>
    %28 = vector.extract_strided_slice %18 {offsets = [0, 96], sizes = [1, 32], strides = [1, 1]} : vector<1x128xf32> to vector<1x32xf32>
    %29 = math.tanh %28 : vector<1x32xf32>
    %30 = arith.mulf %26, %12 : vector<1x32xf32>
    %31 = arith.mulf %25, %29 : vector<1x32xf32>
    %32 = arith.addf %30, %31 : vector<1x32xf32>
    %33 = math.tanh %32 : vector<1x32xf32>
    %34 = arith.mulf %27, %33 : vector<1x32xf32>
    %cst_21 = arith.constant dense<0.000000e+00> : vector<1x128xf32>
    %35 = tpu.matmul %34, %7, %cst_21 {dimension_numbers = #tpu.dot_dimension_numbers<[1], [0], [0], [1], [0, 0, 1, 1], [], []>} : vector<1x32xf32>, vector<32x128xf32>, vector<1x128xf32> -> vector<1x128xf32>
    %36 = arith.addf %15, %35 : vector<1x128xf32>
    %37 = vector.extract_strided_slice %36 {offsets = [0, 0], sizes = [1, 96], strides = [1, 1]} : vector<1x128xf32> to vector<1x96xf32>
    %38 = arith.negf %37 : vector<1x96xf32>
    %39 = math.exp %38 : vector<1x96xf32>
    %cst_22 = arith.constant 1.000000e+00 : f32
    %40 = vector.broadcast %cst_22 : f32 to vector<1x96xf32>
    %41 = arith.addf %40, %39 : vector<1x96xf32>
    %42 = arith.divf %40, %41 : vector<1x96xf32>
    %43 = vector.extract_strided_slice %42 {offsets = [0, 0], sizes = [1, 32], strides = [1, 1]} : vector<1x96xf32> to vector<1x32xf32>
    %44 = vector.extract_strided_slice %42 {offsets = [0, 32], sizes = [1, 32], strides = [1, 1]} : vector<1x96xf32> to vector<1x32xf32>
    %45 = vector.extract_strided_slice %42 {offsets = [0, 64], sizes = [1, 32], strides = [1, 1]} : vector<1x96xf32> to vector<1x32xf32>
    %46 = vector.extract_strided_slice %36 {offsets = [0, 96], sizes = [1, 32], strides = [1, 1]} : vector<1x128xf32> to vector<1x32xf32>
    %47 = math.tanh %46 : vector<1x32xf32>
    %48 = arith.mulf %44, %13 : vector<1x32xf32>
    %49 = arith.mulf %43, %47 : vector<1x32xf32>
    %50 = arith.addf %48, %49 : vector<1x32xf32>
    %51 = math.tanh %50 : vector<1x32xf32>
    %52 = arith.mulf %45, %51 : vector<1x32xf32>
    %cst_23 = arith.constant dense<0.000000e+00> : vector<1x128xf32>
    %53 = tpu.matmul %52, %8, %cst_23 {dimension_numbers = #tpu.dot_dimension_numbers<[1], [0], [0], [1], [0, 0, 1, 1], [], []>} : vector<1x32xf32>, vector<32x128xf32>, vector<1x128xf32> -> vector<1x128xf32>
    %54 = arith.addf %53, %9 : vector<1x128xf32>
    %55 = vector.extract_strided_slice %5 {offsets = [1, 0], sizes = [1, 128], strides = [1, 1]} : vector<8x128xf32> to vector<1x128xf32>
    %cst_24 = arith.constant dense<0.000000e+00> : vector<1x128xf32>
    %56 = tpu.matmul %34, %6, %cst_24 {dimension_numbers = #tpu.dot_dimension_numbers<[1], [0], [0], [1], [0, 0, 1, 1], [], []>} : vector<1x32xf32>, vector<32x128xf32>, vector<1x128xf32> -> vector<1x128xf32>
    %57 = arith.addf %55, %56 : vector<1x128xf32>
    %58 = vector.extract_strided_slice %57 {offsets = [0, 0], sizes = [1, 96], strides = [1, 1]} : vector<1x128xf32> to vector<1x96xf32>
    %59 = arith.negf %58 : vector<1x96xf32>
    %60 = math.exp %59 : vector<1x96xf32>
    %cst_25 = arith.constant 1.000000e+00 : f32
    %61 = vector.broadcast %cst_25 : f32 to vector<1x96xf32>
    %62 = arith.addf %61, %60 : vector<1x96xf32>
    %63 = arith.divf %61, %62 : vector<1x96xf32>
    %64 = vector.extract_strided_slice %63 {offsets = [0, 0], sizes = [1, 32], strides = [1, 1]} : vector<1x96xf32> to vector<1x32xf32>
    %65 = vector.extract_strided_slice %63 {offsets = [0, 32], sizes = [1, 32], strides = [1, 1]} : vector<1x96xf32> to vector<1x32xf32>
    %66 = vector.extract_strided_slice %63 {offsets = [0, 64], sizes = [1, 32], strides = [1, 1]} : vector<1x96xf32> to vector<1x32xf32>
    %67 = vector.extract_strided_slice %57 {offsets = [0, 96], sizes = [1, 32], strides = [1, 1]} : vector<1x128xf32> to vector<1x32xf32>
    %68 = math.tanh %67 : vector<1x32xf32>
    %69 = arith.mulf %65, %32 : vector<1x32xf32>
    %70 = arith.mulf %64, %68 : vector<1x32xf32>
    %71 = arith.addf %69, %70 : vector<1x32xf32>
    %72 = math.tanh %71 : vector<1x32xf32>
    %73 = arith.mulf %66, %72 : vector<1x32xf32>
    %cst_26 = arith.constant dense<0.000000e+00> : vector<1x128xf32>
    %74 = tpu.matmul %73, %7, %cst_26 {dimension_numbers = #tpu.dot_dimension_numbers<[1], [0], [0], [1], [0, 0, 1, 1], [], []>} : vector<1x32xf32>, vector<32x128xf32>, vector<1x128xf32> -> vector<1x128xf32>
    %75 = arith.addf %54, %74 : vector<1x128xf32>
    %76 = vector.extract_strided_slice %75 {offsets = [0, 0], sizes = [1, 96], strides = [1, 1]} : vector<1x128xf32> to vector<1x96xf32>
    %77 = arith.negf %76 : vector<1x96xf32>
    %78 = math.exp %77 : vector<1x96xf32>
    %cst_27 = arith.constant 1.000000e+00 : f32
    %79 = vector.broadcast %cst_27 : f32 to vector<1x96xf32>
    %80 = arith.addf %79, %78 : vector<1x96xf32>
    %81 = arith.divf %79, %80 : vector<1x96xf32>
    %82 = vector.extract_strided_slice %81 {offsets = [0, 0], sizes = [1, 32], strides = [1, 1]} : vector<1x96xf32> to vector<1x32xf32>
    %83 = vector.extract_strided_slice %81 {offsets = [0, 32], sizes = [1, 32], strides = [1, 1]} : vector<1x96xf32> to vector<1x32xf32>
    %84 = vector.extract_strided_slice %81 {offsets = [0, 64], sizes = [1, 32], strides = [1, 1]} : vector<1x96xf32> to vector<1x32xf32>
    %85 = vector.extract_strided_slice %75 {offsets = [0, 96], sizes = [1, 32], strides = [1, 1]} : vector<1x128xf32> to vector<1x32xf32>
    %86 = math.tanh %85 : vector<1x32xf32>
    %87 = arith.mulf %83, %50 : vector<1x32xf32>
    %88 = arith.mulf %82, %86 : vector<1x32xf32>
    %89 = arith.addf %87, %88 : vector<1x32xf32>
    %90 = math.tanh %89 : vector<1x32xf32>
    %91 = arith.mulf %84, %90 : vector<1x32xf32>
    %cst_28 = arith.constant dense<0.000000e+00> : vector<1x128xf32>
    %92 = tpu.matmul %91, %8, %cst_28 {dimension_numbers = #tpu.dot_dimension_numbers<[1], [0], [0], [1], [0, 0, 1, 1], [], []>} : vector<1x32xf32>, vector<32x128xf32>, vector<1x128xf32> -> vector<1x128xf32>
    %93 = arith.addf %92, %9 : vector<1x128xf32>
    %94 = vector.extract_strided_slice %5 {offsets = [2, 0], sizes = [1, 128], strides = [1, 1]} : vector<8x128xf32> to vector<1x128xf32>
    %cst_29 = arith.constant dense<0.000000e+00> : vector<1x128xf32>
    %95 = tpu.matmul %73, %6, %cst_29 {dimension_numbers = #tpu.dot_dimension_numbers<[1], [0], [0], [1], [0, 0, 1, 1], [], []>} : vector<1x32xf32>, vector<32x128xf32>, vector<1x128xf32> -> vector<1x128xf32>
    %96 = arith.addf %94, %95 : vector<1x128xf32>
    %97 = vector.extract_strided_slice %96 {offsets = [0, 0], sizes = [1, 96], strides = [1, 1]} : vector<1x128xf32> to vector<1x96xf32>
    %98 = arith.negf %97 : vector<1x96xf32>
    %99 = math.exp %98 : vector<1x96xf32>
    %cst_30 = arith.constant 1.000000e+00 : f32
    %100 = vector.broadcast %cst_30 : f32 to vector<1x96xf32>
    %101 = arith.addf %100, %99 : vector<1x96xf32>
    %102 = arith.divf %100, %101 : vector<1x96xf32>
    %103 = vector.extract_strided_slice %102 {offsets = [0, 0], sizes = [1, 32], strides = [1, 1]} : vector<1x96xf32> to vector<1x32xf32>
    %104 = vector.extract_strided_slice %102 {offsets = [0, 32], sizes = [1, 32], strides = [1, 1]} : vector<1x96xf32> to vector<1x32xf32>
    %105 = vector.extract_strided_slice %102 {offsets = [0, 64], sizes = [1, 32], strides = [1, 1]} : vector<1x96xf32> to vector<1x32xf32>
    %106 = vector.extract_strided_slice %96 {offsets = [0, 96], sizes = [1, 32], strides = [1, 1]} : vector<1x128xf32> to vector<1x32xf32>
    %107 = math.tanh %106 : vector<1x32xf32>
    %108 = arith.mulf %104, %71 : vector<1x32xf32>
    %109 = arith.mulf %103, %107 : vector<1x32xf32>
    %110 = arith.addf %108, %109 : vector<1x32xf32>
    %111 = math.tanh %110 : vector<1x32xf32>
    %112 = arith.mulf %105, %111 : vector<1x32xf32>
    %cst_31 = arith.constant dense<0.000000e+00> : vector<1x128xf32>
    %113 = tpu.matmul %112, %7, %cst_31 {dimension_numbers = #tpu.dot_dimension_numbers<[1], [0], [0], [1], [0, 0, 1, 1], [], []>} : vector<1x32xf32>, vector<32x128xf32>, vector<1x128xf32> -> vector<1x128xf32>
    %114 = arith.addf %93, %113 : vector<1x128xf32>
    %115 = vector.extract_strided_slice %114 {offsets = [0, 0], sizes = [1, 96], strides = [1, 1]} : vector<1x128xf32> to vector<1x96xf32>
    %116 = arith.negf %115 : vector<1x96xf32>
    %117 = math.exp %116 : vector<1x96xf32>
    %cst_32 = arith.constant 1.000000e+00 : f32
    %118 = vector.broadcast %cst_32 : f32 to vector<1x96xf32>
    %119 = arith.addf %118, %117 : vector<1x96xf32>
    %120 = arith.divf %118, %119 : vector<1x96xf32>
    %121 = vector.extract_strided_slice %120 {offsets = [0, 0], sizes = [1, 32], strides = [1, 1]} : vector<1x96xf32> to vector<1x32xf32>
    %122 = vector.extract_strided_slice %120 {offsets = [0, 32], sizes = [1, 32], strides = [1, 1]} : vector<1x96xf32> to vector<1x32xf32>
    %123 = vector.extract_strided_slice %120 {offsets = [0, 64], sizes = [1, 32], strides = [1, 1]} : vector<1x96xf32> to vector<1x32xf32>
    %124 = vector.extract_strided_slice %114 {offsets = [0, 96], sizes = [1, 32], strides = [1, 1]} : vector<1x128xf32> to vector<1x32xf32>
    %125 = math.tanh %124 : vector<1x32xf32>
    %126 = arith.mulf %122, %89 : vector<1x32xf32>
    %127 = arith.mulf %121, %125 : vector<1x32xf32>
    %128 = arith.addf %126, %127 : vector<1x32xf32>
    %129 = math.tanh %128 : vector<1x32xf32>
    %130 = arith.mulf %123, %129 : vector<1x32xf32>
    %cst_33 = arith.constant dense<0.000000e+00> : vector<1x128xf32>
    %131 = tpu.matmul %130, %8, %cst_33 {dimension_numbers = #tpu.dot_dimension_numbers<[1], [0], [0], [1], [0, 0, 1, 1], [], []>} : vector<1x32xf32>, vector<32x128xf32>, vector<1x128xf32> -> vector<1x128xf32>
    %132 = arith.addf %131, %9 : vector<1x128xf32>
    %133 = vector.extract_strided_slice %5 {offsets = [3, 0], sizes = [1, 128], strides = [1, 1]} : vector<8x128xf32> to vector<1x128xf32>
    %cst_34 = arith.constant dense<0.000000e+00> : vector<1x128xf32>
    %134 = tpu.matmul %112, %6, %cst_34 {dimension_numbers = #tpu.dot_dimension_numbers<[1], [0], [0], [1], [0, 0, 1, 1], [], []>} : vector<1x32xf32>, vector<32x128xf32>, vector<1x128xf32> -> vector<1x128xf32>
    %135 = arith.addf %133, %134 : vector<1x128xf32>
    %136 = vector.extract_strided_slice %135 {offsets = [0, 0], sizes = [1, 96], strides = [1, 1]} : vector<1x128xf32> to vector<1x96xf32>
    %137 = arith.negf %136 : vector<1x96xf32>
    %138 = math.exp %137 : vector<1x96xf32>
    %cst_35 = arith.constant 1.000000e+00 : f32
    %139 = vector.broadcast %cst_35 : f32 to vector<1x96xf32>
    %140 = arith.addf %139, %138 : vector<1x96xf32>
    %141 = arith.divf %139, %140 : vector<1x96xf32>
    %142 = vector.extract_strided_slice %141 {offsets = [0, 0], sizes = [1, 32], strides = [1, 1]} : vector<1x96xf32> to vector<1x32xf32>
    %143 = vector.extract_strided_slice %141 {offsets = [0, 32], sizes = [1, 32], strides = [1, 1]} : vector<1x96xf32> to vector<1x32xf32>
    %144 = vector.extract_strided_slice %141 {offsets = [0, 64], sizes = [1, 32], strides = [1, 1]} : vector<1x96xf32> to vector<1x32xf32>
    %145 = vector.extract_strided_slice %135 {offsets = [0, 96], sizes = [1, 32], strides = [1, 1]} : vector<1x128xf32> to vector<1x32xf32>
    %146 = math.tanh %145 : vector<1x32xf32>
    %147 = arith.mulf %143, %110 : vector<1x32xf32>
    %148 = arith.mulf %142, %146 : vector<1x32xf32>
    %149 = arith.addf %147, %148 : vector<1x32xf32>
    %150 = math.tanh %149 : vector<1x32xf32>
    %151 = arith.mulf %144, %150 : vector<1x32xf32>
    %cst_36 = arith.constant dense<0.000000e+00> : vector<1x128xf32>
    %152 = tpu.matmul %151, %7, %cst_36 {dimension_numbers = #tpu.dot_dimension_numbers<[1], [0], [0], [1], [0, 0, 1, 1], [], []>} : vector<1x32xf32>, vector<32x128xf32>, vector<1x128xf32> -> vector<1x128xf32>
    %153 = arith.addf %132, %152 : vector<1x128xf32>
    %154 = vector.extract_strided_slice %153 {offsets = [0, 0], sizes = [1, 96], strides = [1, 1]} : vector<1x128xf32> to vector<1x96xf32>
    %155 = arith.negf %154 : vector<1x96xf32>
    %156 = math.exp %155 : vector<1x96xf32>
    %cst_37 = arith.constant 1.000000e+00 : f32
    %157 = vector.broadcast %cst_37 : f32 to vector<1x96xf32>
    %158 = arith.addf %157, %156 : vector<1x96xf32>
    %159 = arith.divf %157, %158 : vector<1x96xf32>
    %160 = vector.extract_strided_slice %159 {offsets = [0, 0], sizes = [1, 32], strides = [1, 1]} : vector<1x96xf32> to vector<1x32xf32>
    %161 = vector.extract_strided_slice %159 {offsets = [0, 32], sizes = [1, 32], strides = [1, 1]} : vector<1x96xf32> to vector<1x32xf32>
    %162 = vector.extract_strided_slice %159 {offsets = [0, 64], sizes = [1, 32], strides = [1, 1]} : vector<1x96xf32> to vector<1x32xf32>
    %163 = vector.extract_strided_slice %153 {offsets = [0, 96], sizes = [1, 32], strides = [1, 1]} : vector<1x128xf32> to vector<1x32xf32>
    %164 = math.tanh %163 : vector<1x32xf32>
    %165 = arith.mulf %161, %128 : vector<1x32xf32>
    %166 = arith.mulf %160, %164 : vector<1x32xf32>
    %167 = arith.addf %165, %166 : vector<1x32xf32>
    %168 = math.tanh %167 : vector<1x32xf32>
    %169 = arith.mulf %162, %168 : vector<1x32xf32>
    %cst_38 = arith.constant dense<0.000000e+00> : vector<1x128xf32>
    %170 = tpu.matmul %169, %8, %cst_38 {dimension_numbers = #tpu.dot_dimension_numbers<[1], [0], [0], [1], [0, 0, 1, 1], [], []>} : vector<1x32xf32>, vector<32x128xf32>, vector<1x128xf32> -> vector<1x128xf32>
    %171 = arith.addf %170, %9 : vector<1x128xf32>
    %172 = vector.extract_strided_slice %5 {offsets = [4, 0], sizes = [1, 128], strides = [1, 1]} : vector<8x128xf32> to vector<1x128xf32>
    %cst_39 = arith.constant dense<0.000000e+00> : vector<1x128xf32>
    %173 = tpu.matmul %151, %6, %cst_39 {dimension_numbers = #tpu.dot_dimension_numbers<[1], [0], [0], [1], [0, 0, 1, 1], [], []>} : vector<1x32xf32>, vector<32x128xf32>, vector<1x128xf32> -> vector<1x128xf32>
    %174 = arith.addf %172, %173 : vector<1x128xf32>
    %175 = vector.extract_strided_slice %174 {offsets = [0, 0], sizes = [1, 96], strides = [1, 1]} : vector<1x128xf32> to vector<1x96xf32>
    %176 = arith.negf %175 : vector<1x96xf32>
    %177 = math.exp %176 : vector<1x96xf32>
    %cst_40 = arith.constant 1.000000e+00 : f32
    %178 = vector.broadcast %cst_40 : f32 to vector<1x96xf32>
    %179 = arith.addf %178, %177 : vector<1x96xf32>
    %180 = arith.divf %178, %179 : vector<1x96xf32>
    %181 = vector.extract_strided_slice %180 {offsets = [0, 0], sizes = [1, 32], strides = [1, 1]} : vector<1x96xf32> to vector<1x32xf32>
    %182 = vector.extract_strided_slice %180 {offsets = [0, 32], sizes = [1, 32], strides = [1, 1]} : vector<1x96xf32> to vector<1x32xf32>
    %183 = vector.extract_strided_slice %180 {offsets = [0, 64], sizes = [1, 32], strides = [1, 1]} : vector<1x96xf32> to vector<1x32xf32>
    %184 = vector.extract_strided_slice %174 {offsets = [0, 96], sizes = [1, 32], strides = [1, 1]} : vector<1x128xf32> to vector<1x32xf32>
    %185 = math.tanh %184 : vector<1x32xf32>
    %186 = arith.mulf %182, %149 : vector<1x32xf32>
    %187 = arith.mulf %181, %185 : vector<1x32xf32>
    %188 = arith.addf %186, %187 : vector<1x32xf32>
    %189 = math.tanh %188 : vector<1x32xf32>
    %190 = arith.mulf %183, %189 : vector<1x32xf32>
    %cst_41 = arith.constant dense<0.000000e+00> : vector<1x128xf32>
    %191 = tpu.matmul %190, %7, %cst_41 {dimension_numbers = #tpu.dot_dimension_numbers<[1], [0], [0], [1], [0, 0, 1, 1], [], []>} : vector<1x32xf32>, vector<32x128xf32>, vector<1x128xf32> -> vector<1x128xf32>
    %192 = arith.addf %171, %191 : vector<1x128xf32>
    %193 = vector.extract_strided_slice %192 {offsets = [0, 0], sizes = [1, 96], strides = [1, 1]} : vector<1x128xf32> to vector<1x96xf32>
    %194 = arith.negf %193 : vector<1x96xf32>
    %195 = math.exp %194 : vector<1x96xf32>
    %cst_42 = arith.constant 1.000000e+00 : f32
    %196 = vector.broadcast %cst_42 : f32 to vector<1x96xf32>
    %197 = arith.addf %196, %195 : vector<1x96xf32>
    %198 = arith.divf %196, %197 : vector<1x96xf32>
    %199 = vector.extract_strided_slice %198 {offsets = [0, 0], sizes = [1, 32], strides = [1, 1]} : vector<1x96xf32> to vector<1x32xf32>
    %200 = vector.extract_strided_slice %198 {offsets = [0, 32], sizes = [1, 32], strides = [1, 1]} : vector<1x96xf32> to vector<1x32xf32>
    %201 = vector.extract_strided_slice %198 {offsets = [0, 64], sizes = [1, 32], strides = [1, 1]} : vector<1x96xf32> to vector<1x32xf32>
    %202 = vector.extract_strided_slice %192 {offsets = [0, 96], sizes = [1, 32], strides = [1, 1]} : vector<1x128xf32> to vector<1x32xf32>
    %203 = math.tanh %202 : vector<1x32xf32>
    %204 = arith.mulf %200, %167 : vector<1x32xf32>
    %205 = arith.mulf %199, %203 : vector<1x32xf32>
    %206 = arith.addf %204, %205 : vector<1x32xf32>
    %207 = math.tanh %206 : vector<1x32xf32>
    %208 = arith.mulf %201, %207 : vector<1x32xf32>
    %cst_43 = arith.constant dense<0.000000e+00> : vector<1x128xf32>
    %209 = tpu.matmul %208, %8, %cst_43 {dimension_numbers = #tpu.dot_dimension_numbers<[1], [0], [0], [1], [0, 0, 1, 1], [], []>} : vector<1x32xf32>, vector<32x128xf32>, vector<1x128xf32> -> vector<1x128xf32>
    %210 = arith.addf %209, %9 : vector<1x128xf32>
    %211 = vector.extract_strided_slice %5 {offsets = [5, 0], sizes = [1, 128], strides = [1, 1]} : vector<8x128xf32> to vector<1x128xf32>
    %cst_44 = arith.constant dense<0.000000e+00> : vector<1x128xf32>
    %212 = tpu.matmul %190, %6, %cst_44 {dimension_numbers = #tpu.dot_dimension_numbers<[1], [0], [0], [1], [0, 0, 1, 1], [], []>} : vector<1x32xf32>, vector<32x128xf32>, vector<1x128xf32> -> vector<1x128xf32>
    %213 = arith.addf %211, %212 : vector<1x128xf32>
    %214 = vector.extract_strided_slice %213 {offsets = [0, 0], sizes = [1, 96], strides = [1, 1]} : vector<1x128xf32> to vector<1x96xf32>
    %215 = arith.negf %214 : vector<1x96xf32>
    %216 = math.exp %215 : vector<1x96xf32>
    %cst_45 = arith.constant 1.000000e+00 : f32
    %217 = vector.broadcast %cst_45 : f32 to vector<1x96xf32>
    %218 = arith.addf %217, %216 : vector<1x96xf32>
    %219 = arith.divf %217, %218 : vector<1x96xf32>
    %220 = vector.extract_strided_slice %219 {offsets = [0, 0], sizes = [1, 32], strides = [1, 1]} : vector<1x96xf32> to vector<1x32xf32>
    %221 = vector.extract_strided_slice %219 {offsets = [0, 32], sizes = [1, 32], strides = [1, 1]} : vector<1x96xf32> to vector<1x32xf32>
    %222 = vector.extract_strided_slice %219 {offsets = [0, 64], sizes = [1, 32], strides = [1, 1]} : vector<1x96xf32> to vector<1x32xf32>
    %223 = vector.extract_strided_slice %213 {offsets = [0, 96], sizes = [1, 32], strides = [1, 1]} : vector<1x128xf32> to vector<1x32xf32>
    %224 = math.tanh %223 : vector<1x32xf32>
    %225 = arith.mulf %221, %188 : vector<1x32xf32>
    %226 = arith.mulf %220, %224 : vector<1x32xf32>
    %227 = arith.addf %225, %226 : vector<1x32xf32>
    %228 = math.tanh %227 : vector<1x32xf32>
    %229 = arith.mulf %222, %228 : vector<1x32xf32>
    %cst_46 = arith.constant dense<0.000000e+00> : vector<1x128xf32>
    %230 = tpu.matmul %229, %7, %cst_46 {dimension_numbers = #tpu.dot_dimension_numbers<[1], [0], [0], [1], [0, 0, 1, 1], [], []>} : vector<1x32xf32>, vector<32x128xf32>, vector<1x128xf32> -> vector<1x128xf32>
    %231 = arith.addf %210, %230 : vector<1x128xf32>
    %232 = vector.extract_strided_slice %231 {offsets = [0, 0], sizes = [1, 96], strides = [1, 1]} : vector<1x128xf32> to vector<1x96xf32>
    %233 = arith.negf %232 : vector<1x96xf32>
    %234 = math.exp %233 : vector<1x96xf32>
    %cst_47 = arith.constant 1.000000e+00 : f32
    %235 = vector.broadcast %cst_47 : f32 to vector<1x96xf32>
    %236 = arith.addf %235, %234 : vector<1x96xf32>
    %237 = arith.divf %235, %236 : vector<1x96xf32>
    %238 = vector.extract_strided_slice %237 {offsets = [0, 0], sizes = [1, 32], strides = [1, 1]} : vector<1x96xf32> to vector<1x32xf32>
    %239 = vector.extract_strided_slice %237 {offsets = [0, 32], sizes = [1, 32], strides = [1, 1]} : vector<1x96xf32> to vector<1x32xf32>
    %240 = vector.extract_strided_slice %237 {offsets = [0, 64], sizes = [1, 32], strides = [1, 1]} : vector<1x96xf32> to vector<1x32xf32>
    %241 = vector.extract_strided_slice %231 {offsets = [0, 96], sizes = [1, 32], strides = [1, 1]} : vector<1x128xf32> to vector<1x32xf32>
    %242 = math.tanh %241 : vector<1x32xf32>
    %243 = arith.mulf %239, %206 : vector<1x32xf32>
    %244 = arith.mulf %238, %242 : vector<1x32xf32>
    %245 = arith.addf %243, %244 : vector<1x32xf32>
    %246 = math.tanh %245 : vector<1x32xf32>
    %247 = arith.mulf %240, %246 : vector<1x32xf32>
    %cst_48 = arith.constant dense<0.000000e+00> : vector<1x128xf32>
    %248 = tpu.matmul %247, %8, %cst_48 {dimension_numbers = #tpu.dot_dimension_numbers<[1], [0], [0], [1], [0, 0, 1, 1], [], []>} : vector<1x32xf32>, vector<32x128xf32>, vector<1x128xf32> -> vector<1x128xf32>
    %249 = arith.addf %248, %9 : vector<1x128xf32>
    %250 = vector.extract_strided_slice %5 {offsets = [6, 0], sizes = [1, 128], strides = [1, 1]} : vector<8x128xf32> to vector<1x128xf32>
    %cst_49 = arith.constant dense<0.000000e+00> : vector<1x128xf32>
    %251 = tpu.matmul %229, %6, %cst_49 {dimension_numbers = #tpu.dot_dimension_numbers<[1], [0], [0], [1], [0, 0, 1, 1], [], []>} : vector<1x32xf32>, vector<32x128xf32>, vector<1x128xf32> -> vector<1x128xf32>
    %252 = arith.addf %250, %251 : vector<1x128xf32>
    %253 = vector.extract_strided_slice %252 {offsets = [0, 0], sizes = [1, 96], strides = [1, 1]} : vector<1x128xf32> to vector<1x96xf32>
    %254 = arith.negf %253 : vector<1x96xf32>
    %255 = math.exp %254 : vector<1x96xf32>
    %cst_50 = arith.constant 1.000000e+00 : f32
    %256 = vector.broadcast %cst_50 : f32 to vector<1x96xf32>
    %257 = arith.addf %256, %255 : vector<1x96xf32>
    %258 = arith.divf %256, %257 : vector<1x96xf32>
    %259 = vector.extract_strided_slice %258 {offsets = [0, 0], sizes = [1, 32], strides = [1, 1]} : vector<1x96xf32> to vector<1x32xf32>
    %260 = vector.extract_strided_slice %258 {offsets = [0, 32], sizes = [1, 32], strides = [1, 1]} : vector<1x96xf32> to vector<1x32xf32>
    %261 = vector.extract_strided_slice %258 {offsets = [0, 64], sizes = [1, 32], strides = [1, 1]} : vector<1x96xf32> to vector<1x32xf32>
    %262 = vector.extract_strided_slice %252 {offsets = [0, 96], sizes = [1, 32], strides = [1, 1]} : vector<1x128xf32> to vector<1x32xf32>
    %263 = math.tanh %262 : vector<1x32xf32>
    %264 = arith.mulf %260, %227 : vector<1x32xf32>
    %265 = arith.mulf %259, %263 : vector<1x32xf32>
    %266 = arith.addf %264, %265 : vector<1x32xf32>
    %267 = math.tanh %266 : vector<1x32xf32>
    %268 = arith.mulf %261, %267 : vector<1x32xf32>
    %cst_51 = arith.constant dense<0.000000e+00> : vector<1x128xf32>
    %269 = tpu.matmul %268, %7, %cst_51 {dimension_numbers = #tpu.dot_dimension_numbers<[1], [0], [0], [1], [0, 0, 1, 1], [], []>} : vector<1x32xf32>, vector<32x128xf32>, vector<1x128xf32> -> vector<1x128xf32>
    %270 = arith.addf %249, %269 : vector<1x128xf32>
    %271 = vector.extract_strided_slice %270 {offsets = [0, 0], sizes = [1, 96], strides = [1, 1]} : vector<1x128xf32> to vector<1x96xf32>
    %272 = arith.negf %271 : vector<1x96xf32>
    %273 = math.exp %272 : vector<1x96xf32>
    %cst_52 = arith.constant 1.000000e+00 : f32
    %274 = vector.broadcast %cst_52 : f32 to vector<1x96xf32>
    %275 = arith.addf %274, %273 : vector<1x96xf32>
    %276 = arith.divf %274, %275 : vector<1x96xf32>
    %277 = vector.extract_strided_slice %276 {offsets = [0, 0], sizes = [1, 32], strides = [1, 1]} : vector<1x96xf32> to vector<1x32xf32>
    %278 = vector.extract_strided_slice %276 {offsets = [0, 32], sizes = [1, 32], strides = [1, 1]} : vector<1x96xf32> to vector<1x32xf32>
    %279 = vector.extract_strided_slice %276 {offsets = [0, 64], sizes = [1, 32], strides = [1, 1]} : vector<1x96xf32> to vector<1x32xf32>
    %280 = vector.extract_strided_slice %270 {offsets = [0, 96], sizes = [1, 32], strides = [1, 1]} : vector<1x128xf32> to vector<1x32xf32>
    %281 = math.tanh %280 : vector<1x32xf32>
    %282 = arith.mulf %278, %245 : vector<1x32xf32>
    %283 = arith.mulf %277, %281 : vector<1x32xf32>
    %284 = arith.addf %282, %283 : vector<1x32xf32>
    %285 = math.tanh %284 : vector<1x32xf32>
    %286 = arith.mulf %279, %285 : vector<1x32xf32>
    %cst_53 = arith.constant dense<0.000000e+00> : vector<1x128xf32>
    %287 = tpu.matmul %286, %8, %cst_53 {dimension_numbers = #tpu.dot_dimension_numbers<[1], [0], [0], [1], [0, 0, 1, 1], [], []>} : vector<1x32xf32>, vector<32x128xf32>, vector<1x128xf32> -> vector<1x128xf32>
    %288 = arith.addf %287, %9 : vector<1x128xf32>
    %289 = vector.extract_strided_slice %5 {offsets = [7, 0], sizes = [1, 128], strides = [1, 1]} : vector<8x128xf32> to vector<1x128xf32>
    %cst_54 = arith.constant dense<0.000000e+00> : vector<1x128xf32>
    %290 = tpu.matmul %268, %6, %cst_54 {dimension_numbers = #tpu.dot_dimension_numbers<[1], [0], [0], [1], [0, 0, 1, 1], [], []>} : vector<1x32xf32>, vector<32x128xf32>, vector<1x128xf32> -> vector<1x128xf32>
    %291 = arith.addf %289, %290 : vector<1x128xf32>
    %292 = vector.extract_strided_slice %291 {offsets = [0, 0], sizes = [1, 96], strides = [1, 1]} : vector<1x128xf32> to vector<1x96xf32>
    %293 = arith.negf %292 : vector<1x96xf32>
    %294 = math.exp %293 : vector<1x96xf32>
    %cst_55 = arith.constant 1.000000e+00 : f32
    %295 = vector.broadcast %cst_55 : f32 to vector<1x96xf32>
    %296 = arith.addf %295, %294 : vector<1x96xf32>
    %297 = arith.divf %295, %296 : vector<1x96xf32>
    %298 = vector.extract_strided_slice %297 {offsets = [0, 0], sizes = [1, 32], strides = [1, 1]} : vector<1x96xf32> to vector<1x32xf32>
    %299 = vector.extract_strided_slice %297 {offsets = [0, 32], sizes = [1, 32], strides = [1, 1]} : vector<1x96xf32> to vector<1x32xf32>
    %300 = vector.extract_strided_slice %297 {offsets = [0, 64], sizes = [1, 32], strides = [1, 1]} : vector<1x96xf32> to vector<1x32xf32>
    %301 = vector.extract_strided_slice %291 {offsets = [0, 96], sizes = [1, 32], strides = [1, 1]} : vector<1x128xf32> to vector<1x32xf32>
    %302 = math.tanh %301 : vector<1x32xf32>
    %303 = arith.mulf %299, %266 : vector<1x32xf32>
    %304 = arith.mulf %298, %302 : vector<1x32xf32>
    %305 = arith.addf %303, %304 : vector<1x32xf32>
    %306 = math.tanh %305 : vector<1x32xf32>
    %307 = arith.mulf %300, %306 : vector<1x32xf32>
    %cst_56 = arith.constant dense<0.000000e+00> : vector<1x128xf32>
    %308 = tpu.matmul %307, %7, %cst_56 {dimension_numbers = #tpu.dot_dimension_numbers<[1], [0], [0], [1], [0, 0, 1, 1], [], []>} : vector<1x32xf32>, vector<32x128xf32>, vector<1x128xf32> -> vector<1x128xf32>
    %309 = arith.addf %288, %308 : vector<1x128xf32>
    %310 = vector.extract_strided_slice %309 {offsets = [0, 0], sizes = [1, 96], strides = [1, 1]} : vector<1x128xf32> to vector<1x96xf32>
    %311 = arith.negf %310 : vector<1x96xf32>
    %312 = math.exp %311 : vector<1x96xf32>
    %cst_57 = arith.constant 1.000000e+00 : f32
    %313 = vector.broadcast %cst_57 : f32 to vector<1x96xf32>
    %314 = arith.addf %313, %312 : vector<1x96xf32>
    %315 = arith.divf %313, %314 : vector<1x96xf32>
    %316 = vector.extract_strided_slice %315 {offsets = [0, 0], sizes = [1, 32], strides = [1, 1]} : vector<1x96xf32> to vector<1x32xf32>
    %317 = vector.extract_strided_slice %315 {offsets = [0, 32], sizes = [1, 32], strides = [1, 1]} : vector<1x96xf32> to vector<1x32xf32>
    %318 = vector.extract_strided_slice %315 {offsets = [0, 64], sizes = [1, 32], strides = [1, 1]} : vector<1x96xf32> to vector<1x32xf32>
    %319 = vector.extract_strided_slice %309 {offsets = [0, 96], sizes = [1, 32], strides = [1, 1]} : vector<1x128xf32> to vector<1x32xf32>
    %320 = math.tanh %319 : vector<1x32xf32>
    %321 = arith.mulf %317, %284 : vector<1x32xf32>
    %322 = arith.mulf %316, %320 : vector<1x32xf32>
    %323 = arith.addf %321, %322 : vector<1x32xf32>
    %324 = math.tanh %323 : vector<1x32xf32>
    %325 = arith.mulf %318, %324 : vector<1x32xf32>
    %326 = tpu.concatenate %307, %325, %305, %323 in 0 : vector<1x32xf32>, vector<1x32xf32>, vector<1x32xf32>, vector<1x32xf32> -> vector<4x32xf32>
    %c0_58 = arith.constant 0 : index
    %c0_59 = arith.constant 0 : index
    %327 = vector.load %arg8[%c0_58, %c0_59] : memref<4x32xf32, #tpu.memory_space<vmem>>, vector<4x32xf32>
    tpu.vector_store %arg8[%c0_58, %c0_59], %326 {strides = array<i32>} : memref<4x32xf32, #tpu.memory_space<vmem>>, vector<4x32xf32>,
    return
  }
}

</mosaic_0001>

<bundles_post_ra>
// kernel: lstm_forward.1
= control target key start
LH: loop header
LB: loop body
LE: loop exit
PB: predicated region body
PF: predicated region fallthrough
CT: control target
= control target key end

     0   :  { %13 = vsyncpa [#allocation3], 0  ;;  %s2018_s0 = inlined_call_operand.vmem [shape: f32[8,4], index: 0, kind: input, shape index: {}]   ;;  %s2019_s1 = inlined_call_operand.vmem [shape: f32[4,128], index: 1, kind: input, shape index: {}]   ;;  %s2020_s2 = inlined_call_operand.hbm [shape: f32[32,128], index: 2, kind: input, shape index: {}]   ;;  %s2021_s3 = inlined_call_operand.vmem [shape: f32[1,128], index: 3, kind: input, shape index: {}]   ;;  %s2022_s4 = inlined_call_operand.hbm [shape: f32[32,128], index: 4, kind: input, shape index: {}]   ;;  %s2023_s5 = inlined_call_operand.hbm [shape: f32[32,128], index: 5, kind: input, shape index: {}]   ;;  %s2024_s6 = inlined_call_operand.vmem [shape: f32[1,128], index: 6, kind: input, shape index: {}]   ;;  %s2025_s7 = inlined_call_operand.vmem [shape: f32[4,32], index: 7, kind: input, shape index: {}]   ;;  %s2026_s8 = inlined_call_operand.vmem [shape: f32[4,32], index: 8, kind: output, shape index: {}]  }
   0x1   :  { %14 = vsyncpa [#allocation5], 0  ;;  %s38_s29 = sshll.u32 %s2022_s4, 4  ;;  %s1643_s30 = smov [#allocation4]   ;;  %s39_s29 = int_to_ptr.hbm [resolvable:$true] %s38_s29 }
   0x2   :  { %s40_s9 = sshll.u32 %s1643_s30, 4  ;;  %s23_s12 = sshll.u32 %s2020_s2, 4  ;;  %s41_s9 = int_to_ptr.vmem [resolvable:$true] %s40_s9  ;;  %s24_s12 = int_to_ptr.hbm [resolvable:$true] %s23_s12 }
   0x3   :  { %s1644_s13 = smov 128   ;;  %s1645_s14 = smov 8  }
   0x4   :  { %46 = dma.hbm_to_vmem [thread:$0]  %s39_s29, 512, %s41_s9, [#allocation5], %s1644_s13, %s1644_s13, %s1645_s14  }
   0x5   :  { %s1646_s15 = smov [#allocation2]   ;;  %s51_s19 = sshll.u32 %s2023_s5, 4  ;;  %s52_s19 = int_to_ptr.hbm [resolvable:$true] %s51_s19 }
   0x6   :  { %s25_s16 = sshll.u32 %s1646_s15, 4  ;;  %s1647_s4 = smov [#allocation6]   ;;  %s26_s16 = int_to_ptr.vmem [resolvable:$true] %s25_s16 }
   0x7   :  { %31 = dma.hbm_to_vmem [thread:$0]  %s24_s12, 512, %s26_s16, [#allocation3], %s1644_s13, %s1644_s13, %s1645_s14  }
   0x8   :  { %s53_s20 = sshll.u32 %s1647_s4, 4  ;;  %s54_s20 = int_to_ptr.vmem [resolvable:$true] %s53_s20 }
   0x9   :  { %59 = dma.hbm_to_vmem [thread:$0]  %s52_s19, 512, %s54_s20, [#allocation5], %s1644_s13, %s1644_s13, %s1645_s14  }
   0xa   :  { %1639 = dma.done.wait [#allocation3], 512  }
   0xb   :  { %1640 = vsyncadd [#allocation3], 4294966784 }
   0xc   :  { %1641 = dma.done.wait [#allocation5], 1024  }
   0xd   :  { %1642 = vsyncadd [#allocation5], 4294966272  ;;  %vm86_vm0 = vcmask 1043456   ;;  %v1704_v0 = vld [vmem:[#allocation2 + $0x18] sm:$0xff]  ;;  %v1706_v1 = vld [vmem:[#allocation2 + $0x10] sm:$0xff]  ;;  %vm82_vm1 = vcmask 31744  }
   0xe   :  { %166 = vmatpush.msra.mxu2 %v1704_v0  ;;  %v77_v2 = vld [vmem:[%s2019_s1] sm:$0xf]  ;;  %v1712_v3 = vld [vmem:[#allocation2 + $0x8] sm:$0xff]  ;;  %vm127_vm2 = vcmask 261120   ;;  %v1742_v34 = vld [vmem:[#allocation6 + $0x18] sm:$0xff]  ;;  %s1649_s29 = smov 64  }
   0xf   :  { %1386 = vmatpush.msk.msra.mxu0 %vm86_vm0, %v77_v2  ;;  %v76_v4 = vld [vmem:[%s2018_s0] sm:$0xff]  ;;  %s1648_s0 = smov 32   ;;  %v1744_v35 = vld [vmem:[#allocation6 + $0x10] sm:$0xff]  ;;  %143 = vmatpush.msra.mxu1 %v1742_v34  ;;  %v1747_v36 = vld [vmem:[#allocation4 + $0x18] sm:$0xff] }
  0x10   :  { %167 = vmatpush.msra.mxu2 %v1706_v1  ;;  %1387 = vmatmul.msk.f32.vlgmr.msra.gmra.mxu0 %vm82_vm1, %v76_v4  ;;  %v1718_v5 = vld [vmem:[#allocation2] sm:$0xff]  ;;  %v1750_v37 = vld [vmem:[#allocation6 + $0x8] sm:$0xff]  ;;  %v1753_v38 = vld [vmem:[#allocation4 + $0x10] sm:$0xff] }
  0x11   :  { %v123_v6 = vld [vmem:[%s2025_s7] sm:$0x1]  ;;  %v125_v13 = vld [vmem:[%s2025_s7 + $0x2] sm:$0x1]  ;;  %300 = vmatpush.msrb.mxu0 %v1742_v34  ;;  %233 = vmatpush.msra.mxu3 %v1747_v36  ;;  %v1757_v39 = vld [vmem:[#allocation4 + $0x8] sm:$0xff] }
  0x12   :  { %168 = vmatpush.msra.mxu2 %v1712_v3  ;;  %v1435_v7 = vld [vmem:[%s2021_s3] ss:$0 sm:$0xff]  ;;  %144 = vmatpush.msra.mxu1 %v1744_v35  ;;  %v124_v41 = vld [vmem:[%s2025_s7 + $0x1] sm:$0x1]  ;;  %v126_v56 = vld [vmem:[%s2025_s7 + $0x3] sm:$0x1] }
  0x13   :  { %301 = vmatpush.msrb.mxu0 %v1744_v35  ;;  %v1760_v40 = vld [vmem:[#allocation6] sm:$0xff]  ;;  %234 = vmatpush.msra.mxu3 %v1753_v38 }
  0x14   :  { %169 = vmatpush.msra.mxu2 %v1718_v5  ;;  %145 = vmatpush.msra.mxu1 %v1750_v37  ;;  %v1768_v42 = vld [vmem:[#allocation4] sm:$0xff] }
  0x15   :  { %1389 = vmatmul.msk.f32.vlgmr.msra.gmra.mxu2 %vm127_vm2, %v123_v6  ;;  %302 = vmatpush.msrb.mxu0 %v1750_v37  ;;  %v1812_v49 = vld [vmem:[%s2024_s6] sm:$0x1] }
  0x16   :  { %390 = vmatpush.msrb.mxu2 %v1747_v36  ;;  %235 = vmatpush.msra.mxu3 %v1757_v39 }
  0x17   :  { %146 = vmatpush.msra.mxu1 %v1760_v40  ;;  %303 = vmatpush.msrb.mxu0 %v1760_v40 }
  0x18   :  { %391 = vmatpush.msrb.mxu2 %v1753_v38  ;;  %1388 = vmatmul.msk.f32.vlgmr.msra.gmra.mxu1 %vm127_vm2, %v124_v41 }
  0x19   :  { %236 = vmatpush.msra.mxu3 %v1768_v42  ;;  %320 = vmatpush.msrb.mxu1 %v1704_v0 }
  0x1a   :  { %392 = vmatpush.msrb.mxu2 %v1757_v39  ;;  %473 = vmatpush.msra.mxu0 %v1704_v0 }
  0x1b   :  { %453 = vmatpush.msrb.mxu3 %v1742_v34  ;;  %321 = vmatpush.msrb.mxu1 %v1706_v1 }
  0x1c   :  { %393 = vmatpush.msrb.mxu2 %v1768_v42  ;;  %474 = vmatpush.msra.mxu0 %v1706_v1 }
  0x1d   :  { %454 = vmatpush.msrb.mxu3 %v1744_v35  ;;  %322 = vmatpush.msrb.mxu1 %v1712_v3 }
  0x1e   :  { %606 = vmatpush.msra.mxu2 %v1742_v34  ;;  %475 = vmatpush.msra.mxu0 %v1712_v3 }
  0x1f   :  { %455 = vmatpush.msrb.mxu3 %v1750_v37  ;;  %323 = vmatpush.msrb.mxu1 %v1718_v5 }
  0x20   :  { %607 = vmatpush.msra.mxu2 %v1744_v35  ;;  %476 = vmatpush.msra.mxu0 %v1718_v5 }
  0x21   :  { %456 = vmatpush.msrb.mxu3 %v1760_v40  ;;  %543 = vmatpush.msra.mxu1 %v1747_v36 }
  0x22   :  { %608 = vmatpush.msra.mxu2 %v1750_v37 }
  0x23   :  { %544 = vmatpush.msra.mxu1 %v1753_v38 }
  0x24   :  { %609 = vmatpush.msra.mxu2 %v1760_v40 }
  0x25   :  { %545 = vmatpush.msra.mxu1 %v1757_v39 }
  0x27   :  { %546 = vmatpush.msra.mxu1 %v1768_v42 }
  0x8d   :  { %v107_v8 = vpop.f32.mrf.mxu0 }
  0x8e   :  { %v1729_v9 = vadd.f32 %v1435_v7, %v107_v8 }
  0x95   :  { %v148_v46 = vpop.f32.mrf.mxu1 }
  0x96   :  { %v149_v51 = vadd.f32 %v148_v46, %v1812_v49 }
  0x98   :  { %v171_v10 = vpop.f32.mrf.mxu2 }
  0x99   :  { %v174_v11 = vadd.f32 %v171_v10, %v1729_v9 }
  0x9b   :  { %1436 = vtanh.f32 %v174_v11  ;;  %v1390_v14 = vmul.f32 -1.442695, %v174_v11 }
  0x9d   :  { %1438 = vpow2.f32 %v1390_v14 }
  0xa1   :  { %v1437_v12 = vpop.eup %1436 }
  0xa2   :  { %201 = vrot.lane.b32.xlu0 %v1437_v12, %s1648_s0 }
  0xa3   :  { %v1439_v15 = vpop.eup %1438 }
  0xa4   :  { %v178_v16 = vadd.f32 1.0, %v1439_v15 }
  0xa6   :  { %1440 = vrcp.f32 %v178_v16  ;;  %v190_v22 = vand.u32 2147483648, %v178_v16  ;;  %vm184_vm4 = vweird.f32 %v178_v16  ;;  %v188_v23 = vand.u32 2147483647, %v178_v16 }
  0xa8   :  { %v191_v25 = vor.u32 1.1754944e-38, %v190_v22  ;;  %vm189_vm6 = vcmp.eq.f32.partialorder %v188_v23, 8.507059e+37 }
  0xaa   :  { %196 = vrot.lane.b32.xlu0 %v125_v13, %s1648_s0 }
  0xac   :  { %v1441_v17 = vpop.eup %1440 }
  0xad   :  { %v180_v18 = vmul.f32 %v1441_v17, %v178_v16  ;;  %vm185_vm3 = vweird.f32 %v1441_v17 }
  0xae   :  { %vm186_vm5 = vmor %vm184_vm4, %vm185_vm3 }
  0xaf   :  { %v181_v19 = vsub.f32 1.0, %v180_v18 }
  0xb1   :  { %v182_v20 = vmul.f32 %v1441_v17, %v181_v19 }
  0xb3   :  { %v183_v21 = vadd.f32 %v1441_v17, %v182_v20 }
  0xb5   :  { %v187_v24 = vsel %vm186_vm5, %v1441_v17, %v183_v21 }
  0xb6   :  { %v192_v27 = vsel %vm189_vm6, %v191_v25, %v187_v24 }
 0x114   :  { %v202_v26 = vpop.permute.xlu0 %201 }
 0x115   :  { %v204_v28 = vmul.f32 %v202_v26, %v192_v27 }
 0x117   :  { %206 = vrot.lane.b32.xlu1 %v204_v28, %s1648_s0 }
 0x11c   :  { %v197_v29 = vpop.permute.xlu0 %196 }
 0x11d   :  { %v199_v30 = vmul.f32 %v197_v29, %v192_v27 }
 0x189   :  { %v207_v31 = vpop.permute.xlu1 %206 }
 0x18a   :  { %v1738_v32 = vadd.f32 %v207_v31, %v199_v30 }
 0x18c   :  { %1442 = vtanh.f32 %v1738_v32  ;;  %v353_v28 = vrot.slane %v1738_v32, 7 }
 0x192   :  { %v1443_v33 = vpop.eup %1442 }
 0x193   :  { %212 = vrot.lane.b32.xlu1 %v1443_v33, %s1648_s0 }
 0x205   :  { %v213_v43 = vpop.permute.xlu1 %212 }
 0x206   :  { %v215_v44 = vmul.f32 %v213_v43, %v192_v27 }
 0x208   :  { %217 = vrot.lane.b32.xlu2 %v215_v44, %s1649_s29 }
 0x262   :  { %v218_v45 = vpop.permute.xlu2 %217 }
 0x263   :  { %1391 = vmatmul.msk.f32.vlgmr.msra.gmra.mxu3 %vm127_vm2, %v218_v45  ;;  %1394 = vmatmul.msk.f32.vlgmr.msrb.gmra.mxu1 %vm127_vm2, %v218_v45 }
 0x264   :  { %626 = vmatpush.msra.mxu3 %v1704_v0  ;;  %759 = vmatpush.msrb.mxu1 %v1742_v34 }
 0x266   :  { %627 = vmatpush.msra.mxu3 %v1706_v1  ;;  %760 = vmatpush.msrb.mxu1 %v1744_v35 }
 0x268   :  { %628 = vmatpush.msra.mxu3 %v1712_v3  ;;  %761 = vmatpush.msrb.mxu1 %v1750_v37 }
 0x26a   :  { %629 = vmatpush.msra.mxu3 %v1718_v5  ;;  %762 = vmatpush.msrb.mxu1 %v1760_v40 }
 0x2e0   :  { %v325_v47 = vpop.f32.mrf.mxu1 }
 0x2e1   :  { %v329_v48 = vrot.slane %v325_v47, 7 }
 0x2e3   :  { %v331_v50 = vadd.f32 %v329_v48, %v1729_v9 }
 0x2e5   :  { %1444 = vtanh.f32 %v331_v50  ;;  %v1395_v57 = vmul.f32 -1.442695, %v331_v50 }
 0x2e6   :  { %v238_v52 = vpop.f32.mrf.mxu3 }
 0x2e7   :  { %v241_v53 = vadd.f32 %v238_v52, %v149_v51 }
 0x2e9   :  { %1446 = vtanh.f32 %v241_v53  ;;  %v1392_v62 = vmul.f32 -1.442695, %v241_v53 }
 0x2ea   :  { %1448 = vpow2.f32 %v1395_v57 }
 0x2eb   :  { %v1445_v54 = vpop.eup %1444 }
 0x2ec   :  { %357 = vrot.lane.b32.xlu2 %v1445_v54, %s1648_s0 }
 0x2ef   :  { %v1447_v55 = vpop.eup %1446 }
 0x2f0   :  { %268 = vrot.lane.b32.xlu0 %v1447_v55, %s1648_s0  ;;  %v1449_v58 = vpop.eup %1448 }
 0x2f1   :  { %v335_v59 = vadd.f32 1.0, %v1449_v58 }
 0x2f3   :  { %1450 = vrcp.f32 %v335_v59  ;;  %v347_v7 = vand.u32 2147483648, %v335_v59  ;;  %vm341_vm8 = vweird.f32 %v335_v59  ;;  %v345_v8 = vand.u32 2147483647, %v335_v59 }
 0x2f4   :  { %263 = vrot.lane.b32.xlu2 %v126_v56, %s1648_s0  ;;  %1452 = vpow2.f32 %v1392_v62 }
 0x2f5   :  { %v348_v12 = vor.u32 1.1754944e-38, %v347_v7  ;;  %vm346_vm10 = vcmp.eq.f32.partialorder %v345_v8, 8.507059e+37 }
 0x2f9   :  { %v1451_v60 = vpop.eup %1450 }
 0x2fa   :  { %v337_v61 = vmul.f32 %v1451_v60, %v335_v59  ;;  %v1453_v4 = vpop.eup %1452  ;;  %vm342_vm7 = vweird.f32 %v1451_v60 }
 0x2fb   :  { %v245_v10 = vadd.f32 1.0, %v1453_v4  ;;  %vm343_vm9 = vmor %vm341_vm8, %vm342_vm7 }
 0x2fc   :  { %v338_v63 = vsub.f32 1.0, %v337_v61 }
 0x2fd   :  { %1454 = vrcp.f32 %v245_v10  ;;  %v257_v21 = vand.u32 2147483648, %v245_v10  ;;  %vm251_vm12 = vweird.f32 %v245_v10  ;;  %v255_v22 = vand.u32 2147483647, %v245_v10 }
 0x2fe   :  { %v339_v2 = vmul.f32 %v1451_v60, %v338_v63 }
 0x2ff   :  { %v258_v24 = vor.u32 1.1754944e-38, %v257_v21  ;;  %vm256_vm14 = vcmp.eq.f32.partialorder %v255_v22, 8.507059e+37 }
 0x300   :  { %v340_v6 = vadd.f32 %v1451_v60, %v339_v2 }
 0x302   :  { %v344_v11 = vsel %vm343_vm9, %v1451_v60, %v340_v6 }
 0x303   :  { %v349_v14 = vsel %vm346_vm10, %v348_v12, %v344_v11  ;;  %v1455_v16 = vpop.eup %1454 }
 0x304   :  { %v247_v17 = vmul.f32 %v1455_v16, %v245_v10  ;;  %vm252_vm11 = vweird.f32 %v1455_v16  ;;  %v355_v29 = vmul.f32 %v353_v28, %v349_v14 }
 0x305   :  { %vm253_vm13 = vmor %vm251_vm12, %vm252_vm11 }
 0x306   :  { %v248_v18 = vsub.f32 1.0, %v247_v17 }
 0x308   :  { %v249_v19 = vmul.f32 %v1455_v16, %v248_v18 }
 0x30a   :  { %v250_v20 = vadd.f32 %v1455_v16, %v249_v19 }
 0x30c   :  { %v254_v23 = vsel %vm253_vm13, %v1455_v16, %v250_v20 }
 0x30d   :  { %v259_v25 = vsel %vm256_vm14, %v258_v24, %v254_v23 }
 0x346   :  { %v358_v13 = vpop.permute.xlu2 %357 }
 0x347   :  { %v360_v15 = vmul.f32 %v358_v13, %v349_v14 }
 0x349   :  { %362 = vrot.lane.b32.xlu1 %v360_v15, %s1648_s0 }
 0x34e   :  { %v264_v41 = vpop.permute.xlu2 %263 }
 0x34f   :  { %v266_v43 = vmul.f32 %v264_v41, %v259_v25 }
 0x362   :  { %v269_v26 = vpop.permute.xlu0 %268 }
 0x363   :  { %v271_v27 = vmul.f32 %v269_v26, %v259_v25 }
 0x365   :  { %273 = vrot.lane.b32.xlu0 %v271_v27, %s1648_s0 }
 0x3bb   :  { %v363_v30 = vpop.permute.xlu1 %362 }
 0x3bc   :  { %v1825_v31 = vadd.f32 %v363_v30, %v355_v29 }
 0x3be   :  { %1456 = vtanh.f32 %v1825_v31 }
 0x3c4   :  { %v1457_v33 = vpop.eup %1456 }
 0x3c5   :  { %368 = vrot.lane.b32.xlu1 %v1457_v33, %s1648_s0 }
 0x3d7   :  { %v274_v44 = vpop.permute.xlu0 %273 }
 0x3d8   :  { %v1829_v45 = vadd.f32 %v274_v44, %v266_v43 }
 0x3da   :  { %1458 = vtanh.f32 %v1829_v45 }
 0x3e0   :  { %v1459_v46 = vpop.eup %1458 }
 0x3e1   :  { %279 = vrot.lane.b32.xlu2 %v1459_v46, %s1648_s0 }
 0x437   :  { %v369_v32 = vpop.permute.xlu1 %368 }
 0x438   :  { %v371_v47 = vmul.f32 %v369_v32, %v349_v14 }
 0x43a   :  { %v373_v48 = vrot.slane %v371_v47, 1  ;;  %v506_v47 = vrot.slane %v1825_v31, 7 }
 0x43b   :  { %v280_v50 = vpop.permute.xlu2 %279 }
 0x43c   :  { %v282_v51 = vmul.f32 %v280_v50, %v259_v25  ;;  %374 = vrot.lane.b32.xlu0 %v373_v48, %s1649_s29 }
 0x43e   :  { %284 = vrot.lane.b32.xlu1 %v282_v51, %s1649_s29 }
 0x4ae   :  { %v375_v52 = vpop.permute.xlu0 %374 }
 0x4af   :  { %1396 = vmatmul.msk.f32.vlgmr.msrb.gmra.mxu2 %vm127_vm2, %v375_v52 }
 0x4b0   :  { %v285_v53 = vpop.permute.xlu1 %284  ;;  %779 = vmatpush.msrb.mxu2 %v1704_v0 }
 0x4b1   :  { %1393 = vmatmul.msk.f32.vlgmr.msrb.gmra.mxu0 %vm127_vm2, %v285_v53 }
 0x4b2   :  { %696 = vmatpush.msrb.mxu0 %v1747_v36  ;;  %780 = vmatpush.msrb.mxu2 %v1706_v1 }
 0x4b4   :  { %697 = vmatpush.msrb.mxu0 %v1753_v38  ;;  %781 = vmatpush.msrb.mxu2 %v1712_v3 }
 0x4b6   :  { %698 = vmatpush.msrb.mxu0 %v1757_v39  ;;  %782 = vmatpush.msrb.mxu2 %v1718_v5 }
 0x4b8   :  { %699 = vmatpush.msrb.mxu0 %v1768_v42 }
 0x4b9   :  { %1399 = vmatmul.msk.f32.vlgmr.msra.gmra.mxu0 %vm127_vm2, %v375_v52 }
 0x4ba   :  { %912 = vmatpush.msra.mxu0 %v1742_v34 }
 0x4bc   :  { %913 = vmatpush.msra.mxu0 %v1744_v35 }
 0x4be   :  { %914 = vmatpush.msra.mxu0 %v1750_v37 }
 0x4c0   :  { %915 = vmatpush.msra.mxu0 %v1760_v40 }
 0x52e   :  { %v305_v54 = vpop.f32.mrf.mxu0 }
 0x52f   :  { %v306_v55 = vadd.f32 %v305_v54, %v1812_v49 }
 0x532   :  { %v395_v56 = vpop.f32.mrf.mxu2 }
 0x533   :  { %v398_v57 = vadd.f32 %v395_v56, %v306_v55 }
 0x535   :  { %1460 = vtanh.f32 %v398_v57  ;;  %v1397_v63 = vmul.f32 -1.442695, %v398_v57 }
 0x536   :  { %v478_v58 = vpop.f32.mrf.mxu0 }
 0x537   :  { %v482_v59 = vrot.slane %v478_v58, 6 }
 0x539   :  { %v484_v60 = vadd.f32 %v482_v59, %v1729_v9 }
 0x53b   :  { %v1461_v61 = vpop.eup %1460  ;;  %1462 = vtanh.f32 %v484_v60  ;;  %v1400_v8 = vmul.f32 -1.442695, %v484_v60 }
 0x53c   :  { %421 = vrot.lane.b32.xlu2 %v1461_v61, %s1648_s0  ;;  %1464 = vpow2.f32 %v1397_v63 }
 0x541   :  { %v1463_v62 = vpop.eup %1462 }
 0x542   :  { %510 = vrot.lane.b32.xlu0 %v1463_v62, %s1648_s0  ;;  %v1465_v2 = vpop.eup %1464 }
 0x543   :  { %v402_v4 = vadd.f32 1.0, %v1465_v2 }
 0x545   :  { %1466 = vrcp.f32 %v402_v4  ;;  %v414_v13 = vand.u32 2147483648, %v402_v4  ;;  %vm408_vm0 = vweird.f32 %v402_v4  ;;  %v412_v15 = vand.u32 2147483647, %v402_v4 }
 0x546   :  { %1468 = vpow2.f32 %v1400_v8 }
 0x547   :  { %v415_v18 = vor.u32 1.1754944e-38, %v414_v13  ;;  %vm413_vm3 = vcmp.eq.f32.partialorder %v412_v15, 8.507059e+37 }
 0x54b   :  { %v1467_v6 = vpop.eup %1466 }
 0x54c   :  { %v404_v7 = vmul.f32 %v1467_v6, %v402_v4  ;;  %vm409_vm15 = vweird.f32 %v1467_v6  ;;  %v1469_v14 = vpop.eup %1468 }
 0x54d   :  { %vm410_vm1 = vmor %vm408_vm0, %vm409_vm15  ;;  %v488_v17 = vadd.f32 1.0, %v1469_v14 }
 0x54e   :  { %v405_v10 = vsub.f32 1.0, %v404_v7 }
 0x54f   :  { %1470 = vrcp.f32 %v488_v17  ;;  %v500_v27 = vand.u32 2147483648, %v488_v17  ;;  %vm494_vm5 = vweird.f32 %v488_v17  ;;  %v498_v28 = vand.u32 2147483647, %v488_v17 }
 0x550   :  { %v406_v11 = vmul.f32 %v1467_v6, %v405_v10 }
 0x551   :  { %v501_v30 = vor.u32 1.1754944e-38, %v500_v27  ;;  %vm499_vm7 = vcmp.eq.f32.partialorder %v498_v28, 8.507059e+37 }
 0x552   :  { %v407_v12 = vadd.f32 %v1467_v6, %v406_v11 }
 0x554   :  { %v411_v16 = vsel %vm410_vm1, %v1467_v6, %v407_v12 }
 0x555   :  { %v416_v20 = vsel %vm413_vm3, %v415_v18, %v411_v16  ;;  %v1471_v22 = vpop.eup %1470 }
 0x556   :  { %v490_v23 = vmul.f32 %v1471_v22, %v488_v17  ;;  %vm495_vm4 = vweird.f32 %v1471_v22  ;;  %v419_v44 = vmul.f32 %v416_v20, %v1829_v45 }
 0x557   :  { %vm496_vm6 = vmor %vm494_vm5, %vm495_vm4 }
 0x558   :  { %v491_v24 = vsub.f32 1.0, %v490_v23 }
 0x55a   :  { %v492_v25 = vmul.f32 %v1471_v22, %v491_v24 }
 0x55c   :  { %v493_v26 = vadd.f32 %v1471_v22, %v492_v25 }
 0x55e   :  { %v497_v29 = vsel %vm496_vm6, %v1471_v22, %v493_v26 }
 0x55f   :  { %v502_v41 = vsel %vm499_vm7, %v501_v30, %v497_v29 }
 0x560   :  { %v508_v48 = vmul.f32 %v506_v47, %v502_v41 }
 0x596   :  { %v422_v19 = vpop.permute.xlu2 %421 }
 0x597   :  { %v424_v21 = vmul.f32 %v422_v19, %v416_v20 }
 0x599   :  { %426 = vrot.lane.b32.xlu1 %v424_v21, %s1648_s0 }
 0x5b4   :  { %v511_v33 = vpop.permute.xlu0 %510 }
 0x5b5   :  { %v513_v43 = vmul.f32 %v511_v33, %v502_v41 }
 0x5b7   :  { %515 = vrot.lane.b32.xlu2 %v513_v43, %s1648_s0 }
 0x60b   :  { %v427_v46 = vpop.permute.xlu1 %426 }
 0x60c   :  { %v1857_v32 = vadd.f32 %v427_v46, %v419_v44 }
 0x60e   :  { %1472 = vtanh.f32 %v1857_v32 }
 0x611   :  { %v516_v50 = vpop.permute.xlu2 %515 }
 0x612   :  { %v1861_v51 = vadd.f32 %v516_v50, %v508_v48 }
 0x614   :  { %v1473_v52 = vpop.eup %1472  ;;  %1474 = vtanh.f32 %v1861_v51 }
 0x615   :  { %432 = vrot.lane.b32.xlu0 %v1473_v52, %s1648_s0  ;;  %v659_v52 = vrot.slane %v1861_v51, 7 }
 0x61a   :  { %v1475_v53 = vpop.eup %1474 }
 0x61b   :  { %521 = vrot.lane.b32.xlu1 %v1475_v53, %s1648_s0 }
 0x687   :  { %v433_v45 = vpop.permute.xlu0 %432 }
 0x688   :  { %v435_v54 = vmul.f32 %v433_v45, %v416_v20 }
 0x68a   :  { %437 = vrot.lane.b32.xlu2 %v435_v54, %s1649_s29 }
 0x68d   :  { %v522_v55 = vpop.permute.xlu1 %521 }
 0x68e   :  { %v524_v31 = vmul.f32 %v522_v55, %v502_v41 }
 0x690   :  { %v526_v56 = vrot.slane %v524_v31, 2 }
 0x692   :  { %527 = vrot.lane.b32.xlu0 %v526_v56, %s1649_s29 }
 0x6e4   :  { %v438_v57 = vpop.permute.xlu2 %437 }
 0x6e5   :  { %1398 = vmatmul.msk.f32.vlgmr.msrb.gmra.mxu3 %vm127_vm2, %v438_v57 }
 0x6e6   :  { %849 = vmatpush.msrb.mxu3 %v1747_v36 }
 0x6e8   :  { %850 = vmatpush.msrb.mxu3 %v1753_v38 }
 0x6ea   :  { %851 = vmatpush.msrb.mxu3 %v1757_v39 }
 0x6ec   :  { %852 = vmatpush.msrb.mxu3 %v1768_v42 }
 0x704   :  { %v528_v58 = vpop.permute.xlu0 %527 }
 0x705   :  { %1401 = vmatmul.msk.f32.vlgmr.msra.gmra.mxu1 %vm127_vm2, %v528_v58  ;;  %1404 = vmatmul.msk.f32.vlgmr.msra.gmra.mxu3 %vm127_vm2, %v528_v58 }
 0x706   :  { %932 = vmatpush.msra.mxu1 %v1704_v0  ;;  %1065 = vmatpush.msra.mxu3 %v1742_v34 }
 0x708   :  { %933 = vmatpush.msra.mxu1 %v1706_v1  ;;  %1066 = vmatpush.msra.mxu3 %v1744_v35 }
 0x70a   :  { %934 = vmatpush.msra.mxu1 %v1712_v3  ;;  %1067 = vmatpush.msra.mxu3 %v1750_v37 }
 0x70c   :  { %935 = vmatpush.msra.mxu1 %v1718_v5  ;;  %1068 = vmatpush.msra.mxu3 %v1760_v40 }
 0x768   :  { %v458_v59 = vpop.f32.mrf.mxu3 }
 0x769   :  { %v459_v60 = vadd.f32 %v458_v59, %v1812_v49 }
 0x782   :  { %v548_v61 = vpop.f32.mrf.mxu1 }
 0x783   :  { %v551_v62 = vadd.f32 %v548_v61, %v459_v60 }
 0x785   :  { %1476 = vtanh.f32 %v551_v62  ;;  %v1402_v12 = vmul.f32 -1.442695, %v551_v62 }
 0x788   :  { %v631_v63 = vpop.f32.mrf.mxu3 }
 0x789   :  { %v635_v2 = vrot.slane %v631_v63, 5 }
 0x78b   :  { %v1477_v4 = vpop.eup %1476  ;;  %v637_v6 = vadd.f32 %v635_v2, %v1729_v9 }
 0x78c   :  { %574 = vrot.lane.b32.xlu1 %v1477_v4, %s1648_s0 }
 0x78d   :  { %1478 = vtanh.f32 %v637_v6  ;;  %v1405_v8 = vmul.f32 -1.442695, %v637_v6 }
 0x78f   :  { %1480 = vpow2.f32 %v1405_v8 }
 0x793   :  { %v1479_v7 = vpop.eup %1478 }
 0x794   :  { %663 = vrot.lane.b32.xlu2 %v1479_v7, %s1648_s0 }
 0x795   :  { %v1481_v10 = vpop.eup %1480 }
 0x796   :  { %v641_v11 = vadd.f32 1.0, %v1481_v10 }
 0x798   :  { %1482 = vrcp.f32 %v641_v11  ;;  %v653_v21 = vand.u32 2147483648, %v641_v11  ;;  %vm647_vm9 = vweird.f32 %v641_v11  ;;  %v651_v22 = vand.u32 2147483647, %v641_v11 }
 0x799   :  { %1484 = vpow2.f32 %v1402_v12 }
 0x79a   :  { %v654_v25 = vor.u32 1.1754944e-38, %v653_v21  ;;  %vm652_vm11 = vcmp.eq.f32.partialorder %v651_v22, 8.507059e+37 }
 0x79e   :  { %v1483_v13 = vpop.eup %1482 }
 0x79f   :  { %v1485_v14 = vpop.eup %1484  ;;  %v643_v15 = vmul.f32 %v1483_v13, %v641_v11  ;;  %vm648_vm8 = vweird.f32 %v1483_v13 }
 0x7a0   :  { %v555_v16 = vadd.f32 1.0, %v1485_v14  ;;  %vm649_vm10 = vmor %vm647_vm9, %vm648_vm8 }
 0x7a1   :  { %v644_v17 = vsub.f32 1.0, %v643_v15 }
 0x7a2   :  { %1486 = vrcp.f32 %v555_v16  ;;  %v567_v41 = vand.u32 2147483648, %v555_v16  ;;  %vm561_vm13 = vweird.f32 %v555_v16  ;;  %v565_v43 = vand.u32 2147483647, %v555_v16 }
 0x7a3   :  { %v645_v18 = vmul.f32 %v1483_v13, %v644_v17 }
 0x7a4   :  { %v568_v46 = vor.u32 1.1754944e-38, %v567_v41  ;;  %vm566_vm15 = vcmp.eq.f32.partialorder %v565_v43, 8.507059e+37 }
 0x7a5   :  { %v646_v19 = vadd.f32 %v1483_v13, %v645_v18 }
 0x7a7   :  { %v650_v23 = vsel %vm649_vm10, %v1483_v13, %v646_v19 }
 0x7a8   :  { %v1487_v20 = vpop.eup %1486  ;;  %v655_v27 = vsel %vm652_vm11, %v654_v25, %v650_v23 }
 0x7a9   :  { %v557_v24 = vmul.f32 %v1487_v20, %v555_v16  ;;  %vm562_vm12 = vweird.f32 %v1487_v20  ;;  %v661_v53 = vmul.f32 %v659_v52, %v655_v27 }
 0x7aa   :  { %vm563_vm14 = vmor %vm561_vm13, %vm562_vm12 }
 0x7ab   :  { %v558_v29 = vsub.f32 1.0, %v557_v24 }
 0x7ad   :  { %v559_v30 = vmul.f32 %v1487_v20, %v558_v29 }
 0x7af   :  { %v560_v33 = vadd.f32 %v1487_v20, %v559_v30 }
 0x7b1   :  { %v564_v44 = vsel %vm563_vm14, %v1487_v20, %v560_v33 }
 0x7b2   :  { %v569_v48 = vsel %vm566_vm15, %v568_v46, %v564_v44 }
 0x7b3   :  { %v572_v31 = vmul.f32 %v569_v48, %v1857_v32 }
 0x7ee   :  { %v664_v26 = vpop.permute.xlu2 %663 }
 0x7ef   :  { %v666_v28 = vmul.f32 %v664_v26, %v655_v27 }
 0x7f1   :  { %668 = vrot.lane.b32.xlu1 %v666_v28, %s1648_s0 }
 0x7fe   :  { %v575_v47 = vpop.permute.xlu1 %574 }
 0x7ff   :  { %v577_v50 = vmul.f32 %v575_v47, %v569_v48 }
 0x801   :  { %579 = vrot.lane.b32.xlu0 %v577_v50, %s1648_s0 }
 0x863   :  { %v669_v45 = vpop.permute.xlu1 %668 }
 0x864   :  { %v1890_v54 = vadd.f32 %v669_v45, %v661_v53 }
 0x866   :  { %1488 = vtanh.f32 %v1890_v54 }
 0x86c   :  { %v1489_v55 = vpop.eup %1488 }
 0x86d   :  { %674 = vrot.lane.b32.xlu0 %v1489_v55, %s1648_s0 }
 0x873   :  { %v580_v56 = vpop.permute.xlu0 %579 }
 0x874   :  { %v1895_v57 = vadd.f32 %v580_v56, %v572_v31  ;;  %v812_v56 = vrot.slane %v1890_v54, 7 }
 0x876   :  { %1490 = vtanh.f32 %v1895_v57 }
 0x87c   :  { %v1491_v58 = vpop.eup %1490 }
 0x87d   :  { %585 = vrot.lane.b32.xlu2 %v1491_v58, %s1648_s0 }
 0x8d7   :  { %v586_v51 = vpop.permute.xlu2 %585 }
 0x8d8   :  { %v588_v59 = vmul.f32 %v586_v51, %v569_v48 }
 0x8da   :  { %590 = vrot.lane.b32.xlu1 %v588_v59, %s1649_s29 }
 0x8df   :  { %v675_v60 = vpop.permute.xlu0 %674 }
 0x8e0   :  { %v677_v61 = vmul.f32 %v675_v60, %v655_v27 }
 0x8e2   :  { %v679_v62 = vrot.slane %v677_v61, 3 }
 0x8e4   :  { %680 = vrot.lane.b32.xlu2 %v679_v62, %s1649_s29 }
 0x93e   :  { %v681_v63 = vpop.permute.xlu2 %680 }
 0x93f   :  { %1406 = vmatmul.msk.f32.vlgmr.msrb.gmra.mxu0 %vm127_vm2, %v681_v63 }
 0x940   :  { %1085 = vmatpush.msrb.mxu0 %v1704_v0 }
 0x942   :  { %1086 = vmatpush.msrb.mxu0 %v1706_v1 }
 0x944   :  { %1087 = vmatpush.msrb.mxu0 %v1712_v3 }
 0x946   :  { %1088 = vmatpush.msrb.mxu0 %v1718_v5 }
 0x94c   :  { %v591_v32 = vpop.permute.xlu1 %590 }
 0x94d   :  { %1403 = vmatmul.msk.f32.vlgmr.msra.gmra.mxu2 %vm127_vm2, %v591_v32 }
 0x94e   :  { %1002 = vmatpush.msra.mxu2 %v1747_v36 }
 0x950   :  { %1003 = vmatpush.msra.mxu2 %v1753_v38 }
 0x952   :  { %1004 = vmatpush.msra.mxu2 %v1757_v39 }
 0x954   :  { %1005 = vmatpush.msra.mxu2 %v1768_v42 }
 0x955   :  { %1409 = vmatmul.msk.f32.vlgmr.msrb.gmra.mxu2 %vm127_vm2, %v681_v63 }
 0x956   :  { %1218 = vmatpush.msrb.mxu2 %v1742_v34 }
 0x958   :  { %1219 = vmatpush.msrb.mxu2 %v1744_v35 }
 0x95a   :  { %1220 = vmatpush.msrb.mxu2 %v1750_v37 }
 0x95c   :  { %1221 = vmatpush.msrb.mxu2 %v1760_v40 }
 0x9bc   :  { %v701_v6 = vpop.f32.mrf.mxu0 }
 0x9d0   :  { %v611_v2 = vpop.f32.mrf.mxu2 }
 0x9d1   :  { %v612_v4 = vadd.f32 %v611_v2, %v1812_v49 }
 0x9d3   :  { %v704_v7 = vadd.f32 %v701_v6, %v612_v4 }
 0x9d5   :  { %1492 = vtanh.f32 %v704_v7  ;;  %v1407_v35 = vmul.f32 -1.442695, %v704_v7 }
 0x9d8   :  { %v784_v8 = vpop.f32.mrf.mxu2 }
 0x9d9   :  { %v788_v10 = vrot.slane %v784_v8, 4 }
 0x9db   :  { %v1493_v11 = vpop.eup %1492  ;;  %v790_v12 = vadd.f32 %v788_v10, %v1729_v9 }
 0x9dc   :  { %727 = vrot.lane.b32.xlu0 %v1493_v11, %s1648_s0 }
 0x9dd   :  { %1494 = vtanh.f32 %v790_v12  ;;  %v1410_v37 = vmul.f32 -1.442695, %v790_v12 }
 0x9de   :  { %1496 = vpow2.f32 %v1407_v35 }
 0x9df   :  { %1498 = vpow2.f32 %v1410_v37 }
 0x9e3   :  { %v1495_v34 = vpop.eup %1494 }
 0x9e4   :  { %816 = vrot.lane.b32.xlu1 %v1495_v34, %s1648_s0  ;;  %v1497_v40 = vpop.eup %1496 }
 0x9e5   :  { %v708_v13 = vadd.f32 1.0, %v1497_v40  ;;  %v1499_v14 = vpop.eup %1498 }
 0x9e6   :  { %v794_v15 = vadd.f32 1.0, %v1499_v14 }
 0x9e7   :  { %1500 = vrcp.f32 %v708_v13  ;;  %v720_v24 = vand.u32 2147483648, %v708_v13  ;;  %vm714_vm1 = vweird.f32 %v708_v13  ;;  %v718_v25 = vand.u32 2147483647, %v708_v13 }
 0x9e8   :  { %1502 = vrcp.f32 %v794_v15  ;;  %v806_v43 = vand.u32 2147483648, %v794_v15  ;;  %vm800_vm6 = vweird.f32 %v794_v15  ;;  %v804_v44 = vand.u32 2147483647, %v794_v15 }
 0x9e9   :  { %v721_v28 = vor.u32 1.1754944e-38, %v720_v24  ;;  %vm719_vm4 = vcmp.eq.f32.partialorder %v718_v25, 8.507059e+37 }
 0x9ea   :  { %v807_v47 = vor.u32 1.1754944e-38, %v806_v43  ;;  %vm805_vm8 = vcmp.eq.f32.partialorder %v804_v44, 8.507059e+37 }
 0x9ed   :  { %v1501_v16 = vpop.eup %1500 }
 0x9ee   :  { %v710_v17 = vmul.f32 %v1501_v16, %v708_v13  ;;  %v1503_v19 = vpop.eup %1502  ;;  %vm715_vm0 = vweird.f32 %v1501_v16 }
 0x9ef   :  { %v796_v21 = vmul.f32 %v1503_v19, %v794_v15  ;;  %vm716_vm3 = vmor %vm714_vm1, %vm715_vm0  ;;  %vm801_vm5 = vweird.f32 %v1503_v19 }
 0x9f0   :  { %v711_v18 = vsub.f32 1.0, %v710_v17  ;;  %vm802_vm7 = vmor %vm800_vm6, %vm801_vm5 }
 0x9f1   :  { %v797_v23 = vsub.f32 1.0, %v796_v21 }
 0x9f2   :  { %v712_v20 = vmul.f32 %v1501_v16, %v711_v18 }
 0x9f3   :  { %v798_v27 = vmul.f32 %v1503_v19, %v797_v23 }
 0x9f4   :  { %v713_v22 = vadd.f32 %v1501_v16, %v712_v20 }
 0x9f5   :  { %v799_v41 = vadd.f32 %v1503_v19, %v798_v27 }
 0x9f6   :  { %v717_v26 = vsel %vm716_vm3, %v1501_v16, %v713_v22 }
 0x9f7   :  { %v722_v30 = vsel %vm719_vm4, %v721_v28, %v717_v26  ;;  %v803_v46 = vsel %vm802_vm7, %v1503_v19, %v799_v41 }
 0x9f8   :  { %v808_v50 = vsel %vm805_vm8, %v807_v47, %v803_v46  ;;  %v725_v53 = vmul.f32 %v722_v30, %v1895_v57 }
 0x9f9   :  { %v814_v58 = vmul.f32 %v812_v56, %v808_v50 }
 0xa4e   :  { %v728_v29 = vpop.permute.xlu0 %727 }
 0xa4f   :  { %v730_v33 = vmul.f32 %v728_v29, %v722_v30 }
 0xa51   :  { %732 = vrot.lane.b32.xlu2 %v730_v33, %s1648_s0 }
 0xa56   :  { %v817_v48 = vpop.permute.xlu1 %816 }
 0xa57   :  { %v819_v52 = vmul.f32 %v817_v48, %v808_v50 }
 0xa59   :  { %821 = vrot.lane.b32.xlu0 %v819_v52, %s1648_s0 }
 0xaab   :  { %v733_v45 = vpop.permute.xlu2 %732 }
 0xaac   :  { %v1923_v55 = vadd.f32 %v733_v45, %v725_v53 }
 0xaae   :  { %1504 = vtanh.f32 %v1923_v55 }
 0xab4   :  { %v1505_v31 = vpop.eup %1504 }
 0xab5   :  { %738 = vrot.lane.b32.xlu1 %v1505_v31, %s1648_s0 }
 0xacb   :  { %v822_v51 = vpop.permute.xlu0 %821 }
 0xacc   :  { %v1928_v59 = vadd.f32 %v822_v51, %v814_v58 }
 0xace   :  { %1506 = vtanh.f32 %v1928_v59  ;;  %v965_v46 = vrot.slane %v1928_v59, 7 }
 0xad4   :  { %v1507_v60 = vpop.eup %1506 }
 0xad5   :  { %827 = vrot.lane.b32.xlu2 %v1507_v60, %s1648_s0 }
 0xb27   :  { %v739_v57 = vpop.permute.xlu1 %738 }
 0xb28   :  { %v741_v61 = vmul.f32 %v739_v57, %v722_v30 }
 0xb2a   :  { %743 = vrot.lane.b32.xlu0 %v741_v61, %s1649_s29 }
 0xb2f   :  { %v828_v62 = vpop.permute.xlu2 %827 }
 0xb30   :  { %v830_v63 = vmul.f32 %v828_v62, %v808_v50  ;;  %v1564_v62 = vld [vmem:[#allocation4 + $0x18] sm:$0xff] }
 0xb32   :  { %v832_v32 = vrot.slane %v830_v63, 4  ;;  %v1565_v63 = vld [vmem:[#allocation4 + $0x10] sm:$0xff] }
 0xb34   :  { %833 = vrot.lane.b32.xlu1 %v832_v32, %s1649_s29 }
 0xb9c   :  { %v744_v2 = vpop.permute.xlu0 %743 }
 0xb9d   :  { %1408 = vmatmul.msk.f32.vlgmr.msrb.gmra.mxu1 %vm127_vm2, %v744_v2 }
 0xb9e   :  { %1155 = vmatpush.msrb.mxu1 %v1747_v36 }
 0xba0   :  { %1156 = vmatpush.msrb.mxu1 %v1753_v38 }
 0xba2   :  { %1157 = vmatpush.msrb.mxu1 %v1757_v39 }
 0xba4   :  { %1158 = vmatpush.msrb.mxu1 %v1768_v42 }
 0xba6   :  { %v834_v54 = vpop.permute.xlu1 %833 }
 0xba7   :  { %1411 = vmatmul.msk.f32.vlgmr.msrb.gmra.mxu3 %vm127_vm2, %v834_v54  ;;  %1414 = vmatmul.msk.f32.vlgmr.msra.gmra.mxu1 %vm127_vm2, %v834_v54 }
 0xba8   :  { %1238 = vmatpush.msrb.mxu3 %v1704_v0 }
 0xbaa   :  { %1239 = vmatpush.msrb.mxu3 %v1706_v1 }
 0xbac   :  { %1240 = vmatpush.msrb.mxu3 %v1712_v3 }
 0xbae   :  { %1241 = vmatpush.msrb.mxu3 %v1718_v5 }
 0xc1a   :  { %v764_v36 = vpop.f32.mrf.mxu1 }
 0xc1b   :  { %v765_v7 = vadd.f32 %v764_v36, %v1812_v49 }
 0xc24   :  { %v937_v4 = vpop.f32.mrf.mxu1 }
 0xc25   :  { %v941_v38 = vrot.slane %v937_v4, 3 }
 0xc27   :  { %v943_v6 = vadd.f32 %v941_v38, %v1729_v9 }
 0xc29   :  { %1508 = vtanh.f32 %v943_v6  ;;  %v1415_v1 = vmul.f32 -1.442695, %v943_v6 }
 0xc2a   :  { %v854_v8 = vpop.f32.mrf.mxu3 }
 0xc2b   :  { %v857_v10 = vadd.f32 %v854_v8, %v765_v7 }
 0xc2d   :  { %1510 = vtanh.f32 %v857_v10  ;;  %v1412_v35 = vmul.f32 -1.442695, %v857_v10 }
 0xc2e   :  { %1512 = vpow2.f32 %v1415_v1 }
 0xc2f   :  { %v1509_v11 = vpop.eup %1508 }
 0xc30   :  { %969 = vrot.lane.b32.xlu2 %v1509_v11, %s1648_s0 }
 0xc33   :  { %v1511_v0 = vpop.eup %1510 }
 0xc34   :  { %880 = vrot.lane.b32.xlu0 %v1511_v0, %s1648_s0  ;;  %v1513_v3 = vpop.eup %1512 }
 0xc35   :  { %v947_v5 = vadd.f32 1.0, %v1513_v3 }
 0xc37   :  { %1514 = vrcp.f32 %v947_v5  ;;  %v959_v15 = vand.u32 2147483648, %v947_v5  ;;  %vm953_vm10 = vweird.f32 %v947_v5  ;;  %v957_v16 = vand.u32 2147483647, %v947_v5 }
 0xc38   :  { %1516 = vpow2.f32 %v1412_v35 }
 0xc39   :  { %v960_v19 = vor.u32 1.1754944e-38, %v959_v15  ;;  %vm958_vm12 = vcmp.eq.f32.partialorder %v957_v16, 8.507059e+37 }
 0xc3d   :  { %v1515_v12 = vpop.eup %1514 }
 0xc3e   :  { %v949_v34 = vmul.f32 %v1515_v12, %v947_v5  ;;  %v1517_v13 = vpop.eup %1516  ;;  %vm954_vm9 = vweird.f32 %v1515_v12 }
 0xc3f   :  { %v861_v17 = vadd.f32 1.0, %v1517_v13  ;;  %vm955_vm11 = vmor %vm953_vm10, %vm954_vm9 }
 0xc40   :  { %v950_v37 = vsub.f32 1.0, %v949_v34 }
 0xc41   :  { %1518 = vrcp.f32 %v861_v17  ;;  %v873_v28 = vand.u32 2147483648, %v861_v17  ;;  %vm867_vm14 = vweird.f32 %v861_v17  ;;  %v871_v29 = vand.u32 2147483647, %v861_v17 }
 0xc42   :  { %v951_v40 = vmul.f32 %v1515_v12, %v950_v37 }
 0xc43   :  { %v874_v33 = vor.u32 1.1754944e-38, %v873_v28  ;;  %vm872_vm0 = vcmp.eq.f32.partialorder %v871_v29, 8.507059e+37 }
 0xc44   :  { %v952_v14 = vadd.f32 %v1515_v12, %v951_v40 }
 0xc46   :  { %v956_v18 = vsel %vm955_vm11, %v1515_v12, %v952_v14 }
 0xc47   :  { %v961_v21 = vsel %vm958_vm12, %v960_v19, %v956_v18  ;;  %v1519_v23 = vpop.eup %1518 }
 0xc48   :  { %v863_v24 = vmul.f32 %v1519_v23, %v861_v17  ;;  %vm868_vm13 = vweird.f32 %v1519_v23  ;;  %v967_v47 = vmul.f32 %v965_v46, %v961_v21 }
 0xc49   :  { %vm869_vm15 = vmor %vm867_vm14, %vm868_vm13 }
 0xc4a   :  { %v864_v25 = vsub.f32 1.0, %v863_v24 }
 0xc4c   :  { %v865_v26 = vmul.f32 %v1519_v23, %v864_v25 }
 0xc4e   :  { %v866_v27 = vadd.f32 %v1519_v23, %v865_v26 }
 0xc50   :  { %v870_v30 = vsel %vm869_vm15, %v1519_v23, %v866_v27 }
 0xc51   :  { %v875_v43 = vsel %vm872_vm0, %v874_v33, %v870_v30 }
 0xc52   :  { %v878_v52 = vmul.f32 %v875_v43, %v1923_v55 }
 0xc8a   :  { %v970_v20 = vpop.permute.xlu2 %969 }
 0xc8b   :  { %v972_v22 = vmul.f32 %v970_v20, %v961_v21 }
 0xc8d   :  { %974 = vrot.lane.b32.xlu1 %v972_v22, %s1648_s0 }
 0xca6   :  { %v881_v41 = vpop.permute.xlu0 %880 }
 0xca7   :  { %v883_v44 = vmul.f32 %v881_v41, %v875_v43 }
 0xca9   :  { %885 = vrot.lane.b32.xlu2 %v883_v44, %s1648_s0 }
 0xcff   :  { %v975_v48 = vpop.permute.xlu1 %974 }
 0xd00   :  { %v1952_v50 = vadd.f32 %v975_v48, %v967_v47 }
 0xd02   :  { %1520 = vtanh.f32 %v1952_v50  ;;  %v1118_v29 = vrot.slane %v1952_v50, 7 }
 0xd03   :  { %v886_v53 = vpop.permute.xlu2 %885 }
 0xd04   :  { %v1956_v45 = vadd.f32 %v886_v53, %v878_v52 }
 0xd06   :  { %1522 = vtanh.f32 %v1956_v45 }
 0xd08   :  { %v1521_v31 = vpop.eup %1520 }
 0xd09   :  { %980 = vrot.lane.b32.xlu0 %v1521_v31, %s1648_s0 }
 0xd0c   :  { %v1523_v56 = vpop.eup %1522 }
 0xd0d   :  { %891 = vrot.lane.b32.xlu1 %v1523_v56, %s1648_s0 }
 0xd7b   :  { %v981_v58 = vpop.permute.xlu0 %980 }
 0xd7c   :  { %v983_v51 = vmul.f32 %v981_v58, %v961_v21 }
 0xd7e   :  { %v985_v59 = vrot.slane %v983_v51, 5 }
 0xd7f   :  { %v892_v60 = vpop.permute.xlu1 %891 }
 0xd80   :  { %v894_v57 = vmul.f32 %v892_v60, %v875_v43  ;;  %986 = vrot.lane.b32.xlu2 %v985_v59, %s1649_s29  ;;  %v1992_v59 = vld [vmem:[%s2024_s6] sm:$0x1] }
 0xd82   :  { %896 = vrot.lane.b32.xlu0 %v894_v57, %s1649_s29 }
 0xdda   :  { %v987_v55 = vpop.permute.xlu2 %986 }
 0xddb   :  { %1416 = vmatmul.msk.f32.vlgmr.msra.gmra.mxu2 %vm127_vm2, %v987_v55 }
 0xdf4   :  { %v897_v61 = vpop.permute.xlu0 %896 }
 0xdf5   :  { %1413 = vmatmul.msk.f32.vlgmr.msra.gmra.mxu0 %vm127_vm2, %v897_v61 }
 0xdf6   :  { %1308 = vmatpush.msra.mxu0 %v1564_v62 }
 0xdf8   :  { %1309 = vmatpush.msra.mxu0 %v1565_v63 }
 0xdfa   :  { %1310 = vmatpush.msra.mxu0 %v1757_v39 }
 0xdfc   :  { %1311 = vmatpush.msra.mxu0 %v1768_v42 }
 0xdfd   :  { %1419 = vmatmul.msk.f32.vlgmr.msrb.gmra.mxu0 %vm127_vm2, %v987_v55 }
 0xe5e   :  { %v1007_v54 = vpop.f32.mrf.mxu2 }
 0xe72   :  { %v917_v32 = vpop.f32.mrf.mxu0 }
 0xe73   :  { %v918_v2 = vadd.f32 %v917_v32, %v1812_v49 }
 0xe75   :  { %v1010_v36 = vadd.f32 %v1007_v54, %v918_v2 }
 0xe77   :  { %1524 = vtanh.f32 %v1010_v36  ;;  %v1417_v11 = vmul.f32 -1.442695, %v1010_v36 }
 0xe7a   :  { %v1090_v4 = vpop.f32.mrf.mxu0 }
 0xe7b   :  { %v1094_v38 = vrot.slane %v1090_v4, 2 }
 0xe7d   :  { %v1525_v6 = vpop.eup %1524  ;;  %v1096_v7 = vadd.f32 %v1094_v38, %v1729_v9 }
 0xe7e   :  { %1033 = vrot.lane.b32.xlu1 %v1525_v6, %s1648_s0 }
 0xe7f   :  { %1526 = vtanh.f32 %v1096_v7  ;;  %v1420_v39 = vmul.f32 -1.442695, %v1096_v7 }
 0xe81   :  { %1528 = vpow2.f32 %v1420_v39 }
 0xe85   :  { %v1527_v8 = vpop.eup %1526 }
 0xe86   :  { %1122 = vrot.lane.b32.xlu2 %v1527_v8, %s1648_s0 }
 0xe87   :  { %v1529_v42 = vpop.eup %1528 }
 0xe88   :  { %v1100_v10 = vadd.f32 1.0, %v1529_v42 }
 0xe8a   :  { %1530 = vrcp.f32 %v1100_v10  ;;  %v1112_v37 = vand.u32 2147483648, %v1100_v10  ;;  %vm1106_vm3 = vweird.f32 %v1100_v10  ;;  %v1110_v40 = vand.u32 2147483647, %v1100_v10 }
 0xe8b   :  { %1532 = vpow2.f32 %v1417_v11 }
 0xe8c   :  { %v1113_v15 = vor.u32 1.1754944e-38, %v1112_v37  ;;  %vm1111_vm5 = vcmp.eq.f32.partialorder %v1110_v40, 8.507059e+37 }
 0xe90   :  { %v1531_v49 = vpop.eup %1530 }
 0xe91   :  { %v1533_v0 = vpop.eup %1532  ;;  %v1102_v1 = vmul.f32 %v1531_v49, %v1100_v10  ;;  %vm1107_vm1 = vweird.f32 %v1531_v49 }
 0xe92   :  { %v1014_v3 = vadd.f32 1.0, %v1533_v0  ;;  %vm1108_vm4 = vmor %vm1106_vm3, %vm1107_vm1 }
 0xe93   :  { %v1103_v5 = vsub.f32 1.0, %v1102_v1 }
 0xe94   :  { %1534 = vrcp.f32 %v1014_v3  ;;  %v1026_v22 = vand.u32 2147483648, %v1014_v3  ;;  %vm1020_vm7 = vweird.f32 %v1014_v3  ;;  %v1024_v23 = vand.u32 2147483647, %v1014_v3 }
 0xe95   :  { %v1104_v12 = vmul.f32 %v1531_v49, %v1103_v5 }
 0xe96   :  { %v1027_v25 = vor.u32 1.1754944e-38, %v1026_v22  ;;  %vm1025_vm9 = vcmp.eq.f32.partialorder %v1024_v23, 8.507059e+37 }
 0xe97   :  { %v1105_v34 = vadd.f32 %v1531_v49, %v1104_v12 }
 0xe99   :  { %v1109_v13 = vsel %vm1108_vm4, %v1531_v49, %v1105_v34 }
 0xe9a   :  { %v1535_v35 = vpop.eup %1534  ;;  %v1114_v17 = vsel %vm1111_vm5, %v1113_v15, %v1109_v13 }
 0xe9b   :  { %v1016_v14 = vmul.f32 %v1535_v35, %v1014_v3  ;;  %vm1021_vm6 = vweird.f32 %v1535_v35  ;;  %v1120_v30 = vmul.f32 %v1118_v29, %v1114_v17 }
 0xe9c   :  { %vm1022_vm8 = vmor %vm1020_vm7, %vm1021_vm6  ;;  %vm1368_vm6 = vcmask 1040384   ;;  %vm1370_vm7 = vcmask 1041408  }
 0xe9d   :  { %v1017_v19 = vsub.f32 1.0, %v1016_v14 }
 0xe9f   :  { %v1018_v20 = vmul.f32 %v1535_v35, %v1017_v19 }
 0xea1   :  { %v1019_v21 = vadd.f32 %v1535_v35, %v1018_v20 }
 0xea3   :  { %v1023_v24 = vsel %vm1022_vm8, %v1535_v35, %v1019_v21  ;;  %vm1372_vm8 = vcmask 1042432  }
 0xea4   :  { %v1028_v27 = vsel %vm1025_vm9, %v1027_v25, %v1023_v24  ;;  %vm1378_vm9 = vcmask 257024  }
 0xea5   :  { %v1031_v44 = vmul.f32 %v1028_v27, %v1956_v45 }
 0xee0   :  { %v1123_v16 = vpop.permute.xlu2 %1122 }
 0xee1   :  { %v1125_v18 = vmul.f32 %v1123_v16, %v1114_v17 }
 0xee3   :  { %1127 = vrot.lane.b32.xlu1 %v1125_v18, %s1648_s0 }
 0xef0   :  { %v1034_v26 = vpop.permute.xlu1 %1033 }
 0xef1   :  { %v1036_v28 = vmul.f32 %v1034_v26, %v1028_v27 }
 0xef3   :  { %1038 = vrot.lane.b32.xlu0 %v1036_v28, %s1648_s0 }
 0xf55   :  { %v1128_v33 = vpop.permute.xlu1 %1127 }
 0xf56   :  { %v1975_v41 = vadd.f32 %v1128_v33, %v1120_v30 }
 0xf58   :  { %1536 = vtanh.f32 %v1975_v41  ;;  %v1271_v25 = vrot.slane %v1975_v41, 7 }
 0xf5e   :  { %v1537_v43 = vpop.eup %1536 }
 0xf5f   :  { %1133 = vrot.lane.b32.xlu0 %v1537_v43, %s1648_s0 }
 0xf65   :  { %v1039_v46 = vpop.permute.xlu0 %1038 }
 0xf66   :  { %v1980_v47 = vadd.f32 %v1039_v46, %v1031_v44 }
 0xf68   :  { %1538 = vtanh.f32 %v1980_v47 }
 0xf6e   :  { %v1539_v48 = vpop.eup %1538 }
 0xf6f   :  { %1044 = vrot.lane.b32.xlu2 %v1539_v48, %s1648_s0 }
 0xfc9   :  { %v1045_v50 = vpop.permute.xlu2 %1044 }
 0xfca   :  { %v1047_v52 = vmul.f32 %v1045_v50, %v1028_v27 }
 0xfcc   :  { %1049 = vrot.lane.b32.xlu1 %v1047_v52, %s1649_s29 }
 0xfd1   :  { %v1134_v53 = vpop.permute.xlu0 %1133 }
 0xfd2   :  { %v1136_v31 = vmul.f32 %v1134_v53, %v1114_v17 }
 0xfd4   :  { %v1138_v56 = vrot.slane %v1136_v31, 6 }
 0xfd6   :  { %1139 = vrot.lane.b32.xlu2 %v1138_v56, %s1649_s29 }
0x1030   :  { %v1140_v58 = vpop.permute.xlu2 %1139 }
0x1031   :  { %1421 = vmatmul.msk.f32.vlgmr.msrb.gmra.mxu1 %vm127_vm2, %v1140_v58 }
0x103e   :  { %v1050_v45 = vpop.permute.xlu1 %1049 }
0x103f   :  { %1418 = vmatmul.msk.f32.vlgmr.msra.gmra.mxu3 %vm127_vm2, %v1050_v45 }
0x1047   :  { %1424 = vmatmul.msk.f32.vlgmr.msrb.gmra.mxu3 %vm127_vm2, %v1140_v58 }
0x10ae   :  { %v1160_v57 = vpop.f32.mrf.mxu1 }
0x10c2   :  { %v1070_v51 = vpop.f32.mrf.mxu3 }
0x10c3   :  { %v1071_v60 = vadd.f32 %v1992_v59, %v1070_v51 }
0x10c5   :  { %v1163_v55 = vadd.f32 %v1160_v57, %v1071_v60 }
0x10c7   :  { %1540 = vtanh.f32 %v1163_v55  ;;  %v1422_v54 = vmul.f32 -1.442695, %v1163_v55 }
0x10ca   :  { %v1243_v61 = vpop.f32.mrf.mxu3 }
0x10cb   :  { %v1247_v62 = vrot.slane %v1243_v61, 1 }
0x10cd   :  { %v1541_v63 = vpop.eup %1540  ;;  %v1249_v32 = vadd.f32 %v1247_v62, %v1729_v9 }
0x10ce   :  { %1186 = vrot.lane.b32.xlu0 %v1541_v63, %s1648_s0 }
0x10cf   :  { %1542 = vtanh.f32 %v1249_v32  ;;  %v1425_v36 = vmul.f32 -1.442695, %v1249_v32 }
0x10d0   :  { %1544 = vpow2.f32 %v1422_v54 }
0x10d1   :  { %1546 = vpow2.f32 %v1425_v36 }
0x10d5   :  { %v1543_v2 = vpop.eup %1542 }
0x10d6   :  { %1275 = vrot.lane.b32.xlu1 %v1543_v2, %s1648_s0  ;;  %v1545_v4 = vpop.eup %1544 }
0x10d7   :  { %v1167_v38 = vadd.f32 1.0, %v1545_v4  ;;  %v1547_v6 = vpop.eup %1546 }
0x10d8   :  { %v1253_v7 = vadd.f32 1.0, %v1547_v6 }
0x10d9   :  { %1548 = vrcp.f32 %v1167_v38  ;;  %v1179_v1 = vand.u32 2147483648, %v1167_v38  ;;  %vm1173_vm11 = vweird.f32 %v1167_v38  ;;  %v1177_v3 = vand.u32 2147483647, %v1167_v38 }
0x10da   :  { %1550 = vrcp.f32 %v1253_v7  ;;  %v1265_v14 = vand.u32 2147483648, %v1253_v7  ;;  %vm1259_vm15 = vweird.f32 %v1253_v7  ;;  %v1263_v15 = vand.u32 2147483647, %v1253_v7 }
0x10db   :  { %v1180_v34 = vor.u32 1.1754944e-38, %v1179_v1  ;;  %vm1178_vm13 = vcmp.eq.f32.partialorder %v1177_v3, 8.507059e+37 }
0x10dc   :  { %v1266_v17 = vor.u32 1.1754944e-38, %v1265_v14  ;;  %vm1264_vm1 = vcmp.eq.f32.partialorder %v1263_v15, 8.507059e+37 }
0x10df   :  { %v1549_v8 = vpop.eup %1548 }
0x10e0   :  { %v1169_v39 = vmul.f32 %v1549_v8, %v1167_v38  ;;  %v1551_v9 = vpop.eup %1550  ;;  %vm1174_vm10 = vweird.f32 %v1549_v8 }
0x10e1   :  { %v1255_v11 = vmul.f32 %v1551_v9, %v1253_v7  ;;  %vm1175_vm12 = vmor %vm1173_vm11, %vm1174_vm10  ;;  %vm1260_vm14 = vweird.f32 %v1551_v9 }
0x10e2   :  { %v1170_v42 = vsub.f32 1.0, %v1169_v39  ;;  %vm1261_vm0 = vmor %vm1259_vm15, %vm1260_vm14 }
0x10e3   :  { %v1256_v0 = vsub.f32 1.0, %v1255_v11 }
0x10e4   :  { %v1171_v10 = vmul.f32 %v1549_v8, %v1170_v42 }
0x10e5   :  { %v1257_v12 = vmul.f32 %v1551_v9, %v1256_v0 }
0x10e6   :  { %v1172_v49 = vadd.f32 %v1549_v8, %v1171_v10 }
0x10e7   :  { %v1258_v13 = vadd.f32 %v1551_v9, %v1257_v12 }
0x10e8   :  { %v1176_v5 = vsel %vm1175_vm12, %v1549_v8, %v1172_v49 }
0x10e9   :  { %v1181_v37 = vsel %vm1178_vm13, %v1180_v34, %v1176_v5  ;;  %v1262_v16 = vsel %vm1261_vm0, %v1551_v9, %v1258_v13 }
0x10ea   :  { %v1267_v19 = vsel %vm1264_vm1, %v1266_v17, %v1262_v16  ;;  %v1184_v21 = vmul.f32 %v1181_v37, %v1980_v47 }
0x10eb   :  { %v1273_v26 = vmul.f32 %v1271_v25, %v1267_v19 }
0x1140   :  { %v1187_v35 = vpop.permute.xlu0 %1186 }
0x1141   :  { %v1189_v40 = vmul.f32 %v1187_v35, %v1181_v37 }
0x1143   :  { %1191 = vrot.lane.b32.xlu2 %v1189_v40, %s1648_s0 }
0x1148   :  { %v1276_v18 = vpop.permute.xlu1 %1275 }
0x1149   :  { %v1278_v20 = vmul.f32 %v1276_v18, %v1267_v19 }
0x114b   :  { %1280 = vrot.lane.b32.xlu0 %v1278_v20, %s1648_s0 }
0x119d   :  { %v1192_v22 = vpop.permute.xlu2 %1191 }
0x119e   :  { %v1194_v23 = vadd.f32 %v1192_v22, %v1184_v21 }
0x11a0   :  { %1552 = vtanh.f32 %v1194_v23 }
0x11a6   :  { %v1553_v24 = vpop.eup %1552 }
0x11a7   :  { %1197 = vrot.lane.b32.xlu1 %v1553_v24, %s1648_s0 }
0x11bd   :  { %v1281_v27 = vpop.permute.xlu0 %1280 }
0x11be   :  { %v1283_v28 = vadd.f32 %v1281_v27, %v1273_v26 }
0x11c0   :  { %1554 = vtanh.f32 %v1283_v28  ;;  %v1359_v56 = vrot.slane %v1283_v28, 5 }
0x11c6   :  { %v1555_v29 = vpop.eup %1554 }
0x11c7   :  { %1286 = vrot.lane.b32.xlu2 %v1555_v29, %s1648_s0 }
0x1219   :  { %v1198_v30 = vpop.permute.xlu1 %1197 }
0x121a   :  { %v1200_v33 = vmul.f32 %v1198_v30, %v1181_v37 }
0x121c   :  { %1202 = vrot.lane.b32.xlu0 %v1200_v33, %s1649_s29 }
0x1221   :  { %v1287_v43 = vpop.permute.xlu2 %1286 }
0x1222   :  { %v1289_v44 = vmul.f32 %v1287_v43, %v1267_v19 }
0x1224   :  { %v1291_v46 = vrot.slane %v1289_v44, 7 }
0x1226   :  { %1292 = vrot.lane.b32.xlu1 %v1291_v46, %s1649_s29 }
0x128e   :  { %v1203_v47 = vpop.permute.xlu0 %1202 }
0x128f   :  { %1423 = vmatmul.msk.f32.vlgmr.msrb.gmra.mxu2 %vm127_vm2, %v1203_v47 }
0x1298   :  { %v1293_v41 = vpop.permute.xlu1 %1292 }
0x1299   :  { %1426 = vmatmul.msk.f32.vlgmr.msra.gmra.mxu0 %vm127_vm2, %v1293_v41 }
0x1312   :  { %v1223_v48 = vpop.f32.mrf.mxu2 }
0x1313   :  { %v1224_v50 = vadd.f32 %v1992_v59, %v1223_v48 }
0x1316   :  { %v1313_v52 = vpop.f32.mrf.mxu0 }
0x1317   :  { %v1316_v53 = vadd.f32 %v1313_v52, %v1224_v50 }
0x1319   :  { %1556 = vtanh.f32 %v1316_v53  ;;  %v1427_v58 = vmul.f32 -1.442695, %v1316_v53 }
0x131b   :  { %1558 = vpow2.f32 %v1427_v58 }
0x131f   :  { %v1557_v31 = vpop.eup %1556 }
0x1320   :  { %1339 = vrot.lane.b32.xlu2 %v1557_v31, %s1648_s0 }
0x1321   :  { %v1559_v45 = vpop.eup %1558 }
0x1322   :  { %v1320_v51 = vadd.f32 1.0, %v1559_v45 }
0x1324   :  { %1560 = vrcp.f32 %v1320_v51  ;;  %v1332_v59 = vand.u32 2147483648, %v1320_v51  ;;  %vm1326_vm3 = vweird.f32 %v1320_v51  ;;  %v1330_v63 = vand.u32 2147483647, %v1320_v51 }
0x1326   :  { %v1333_v2 = vor.u32 1.1754944e-38, %v1332_v59  ;;  %vm1331_vm5 = vcmp.eq.f32.partialorder %v1330_v63, 8.507059e+37 }
0x1328   :  { %1360 = vrot.lane.b32.xlu2 %v1359_v56, %s1648_s0 }
0x132a   :  { %v1561_v60 = vpop.eup %1560 }
0x132b   :  { %v1322_v57 = vmul.f32 %v1561_v60, %v1320_v51  ;;  %vm1327_vm2 = vweird.f32 %v1561_v60 }
0x132c   :  { %vm1328_vm4 = vmor %vm1326_vm3, %vm1327_vm2 }
0x132d   :  { %v1323_v55 = vsub.f32 1.0, %v1322_v57 }
0x132f   :  { %v1324_v61 = vmul.f32 %v1561_v60, %v1323_v55 }
0x1331   :  { %v1325_v62 = vadd.f32 %v1561_v60, %v1324_v61 }
0x1333   :  { %v1329_v32 = vsel %vm1328_vm4, %v1561_v60, %v1325_v62 }
0x1334   :  { %v1334_v36 = vsel %vm1331_vm5, %v1333_v2, %v1329_v32 }
0x1335   :  { %v1337_v38 = vmul.f32 %v1334_v36, %v1194_v23 }
0x137a   :  { %v1340_v54 = vpop.permute.xlu2 %1339 }
0x137b   :  { %v1342_v4 = vmul.f32 %v1340_v54, %v1334_v36 }
0x137d   :  { %1344 = vrot.lane.b32.xlu0 %v1342_v4, %s1648_s0 }
0x1382   :  { %v1361_v11 = vpop.permute.xlu2 %1360 }
0x13ef   :  { %v1345_v6 = vpop.permute.xlu0 %1344 }
0x13f0   :  { %v1347_v7 = vadd.f32 %v1345_v6, %v1337_v38 }
0x13f2   :  { %1562 = vtanh.f32 %v1347_v7  ;;  %v1364_v8 = vrot.slane %v1347_v7, 5 }
0x13f4   :  { %1365 = vrot.lane.b32.xlu0 %v1364_v8, %s1648_s0 }
0x13f8   :  { %v1563_v39 = vpop.eup %1562 }
0x13f9   :  { %1350 = vrot.lane.b32.xlu1 %v1563_v39, %s1648_s0 }
0x1466   :  { %v1366_v0 = vpop.permute.xlu0 %1365 }
0x146b   :  { %v1351_v42 = vpop.permute.xlu1 %1350 }
0x146c   :  { %v1353_v9 = vmul.f32 %v1351_v42, %v1334_v36 }
0x146e   :  { %v1356_v10 = vrot.slane %v1353_v9, 7 }
0x1470   :  { %v1369_v49 = vsel %vm1368_vm6, %v1291_v46, %v1356_v10 }
0x1471   :  { %v1371_v1 = vsel %vm1370_vm7, %v1369_v49, %v1361_v11 }
0x1472   :  { %v1373_v3 = vsel %vm1372_vm8, %v1371_v1, %v1366_v0 }
0x1473   :  { %1375 = vrot.lane.b32.xlu1 %v1373_v3, %s1649_s29 }
0x14e5   :  { %v1376_v5 = vpop.permute.xlu1 %1375 }
0x14e6   :  { %1379 = vst.msk [vmem:[%s2026_s8] sm:$0xf] %vm1378_vm9, %v1376_v5 }
0x14e7   :  { %1384 = vsyncpa [#allocation3], 1 }
0x14e8   :  { %1385 = vsyncpa [#allocation5], 1 }

</bundles_post_ra>
